<compile_context>
chip_gen: v5e
topology: v5e:2x2
jax: 0.10.0
libtpu: 0.0.40
codegen_flags: <defaults>
</compile_context>

<pallas_src>
import jax
import jax.numpy as jnp
from jax.experimental import pallas as pl
from jax.experimental.pallas import tpu as pltpu


def lstm_kernel(x_ref, wih0_ref, whh0_ref, b0_ref, w1_ref, b1_ref, out_ref):
    """x_ref: (L*N, C) time-major flattened input.
    w1_ref: (2H, 4H) = [w_ih_l1.T ; w_hh_l1.T] packed.
    out_ref: (N, H) last-timestep hidden state of the top layer."""
    N, H = out_ref.shape
    LN = x_ref.shape[0]
    L = LN // N

    # Hoist weights out of the recurrence; cast MXU operands to bf16 once.
    whh0 = whh0_ref[...].astype(jnp.bfloat16)          # (H, 4H)
    w1 = w1_ref[...].astype(jnp.bfloat16)              # (2H, 4H)
    b1b = jnp.broadcast_to(b1_ref[...], (N, 4 * H))    # hoisted broadcast

    # Layer-0 input projection for ALL timesteps in one big MXU matmul,
    # kept as a register-resident value (no VMEM scratch round trip).
    g0 = jnp.dot(x_ref[...].astype(jnp.bfloat16),
                 wih0_ref[...].astype(jnp.bfloat16),
                 preferred_element_type=jnp.float32) + b0_ref[...]

    def gates(g, c_prev):
        # Full-width sigmoid + tanh (2 EUP pushes), then lane-slice the gates,
        # instead of 4 separate sub-vreg activations.  Element-wise math in f32.
        sg = jax.nn.sigmoid(g)
        th = jnp.tanh(g)
        i = sg[:, 0:H]
        f = sg[:, H:2 * H]
        gg = th[:, 2 * H:3 * H]
        o = sg[:, 3 * H:4 * H]
        c_new = f * c_prev + i * gg
        h_new = o * jnp.tanh(c_new)
        return h_new, c_new

    h1 = jnp.zeros((N, H), jnp.float32)
    c1 = jnp.zeros((N, H), jnp.float32)
    h2 = jnp.zeros((N, H), jnp.float32)
    c2 = jnp.zeros((N, H), jnp.float32)

    # L is small & static here: full Python unroll gives static slices of the
    # register-resident g0 and keeps h/c states in vregs.
    # TODO(synk): for large L, switch to lax.fori_loop(unroll=4/8) with a
    # (time-chunked) VMEM scratch for g0 instead of a full unroll.
    for t in range(L):
        # Layer 0: input projection precomputed; only the h-recurrence dot.
        g1 = g0[t * N:(t + 1) * N, :] + jnp.dot(
            h1.astype(jnp.bfloat16), whh0, preferred_element_type=jnp.float32)
        h1, c1 = gates(g1, c1)
        # Layer 1: single fused matmul over the packed (2H, 4H) weight.
        h12 = jnp.concatenate([h1, h2], axis=1).astype(jnp.bfloat16)  # (N, 2H)
        g2 = jnp.dot(h12, w1, preferred_element_type=jnp.float32) + b1b
        h2, c2 = gates(g2, c2)

    out_ref[...] = h2.astype(out_ref.dtype)


def lstm_forward(x, params, d_model):
    """x: (B, M, L, C) -> (B, M, d_model)."""
    B, M, L, C = x.shape
    N = B * M
    H = d_model
    wih0, whh0, b0, w1, b1 = params

    # (B, M, L, C) -> (N, L, C) -> time-major (L, N, C) -> flat (L*N, C).
    # Negligible at this size; fold into an index_map / strided read at scale.
    x_flat = jnp.transpose(x.reshape(N, L, C), (1, 0, 2)).reshape(L * N, C)

    flops = 2 * (L * N * C * 4 * H            # layer-0 input projection
                 + L * N * H * 4 * H          # layer-0 h-recurrence
                 + L * N * 2 * H * 4 * H)     # fused layer-1 matmul
    transcendentals = L * 2 * N * 9 * H       # sigmoid(4H)+tanh(4H)+tanh(H), 2 cells
    bytes_accessed = 4 * (x_flat.size + wih0.size + whh0.size + b0.size
                          + w1.size + b1.size + N * H)

    vmem_spec = pl.BlockSpec(memory_space=pltpu.MemorySpace.VMEM)

    out = pl.pallas_call(
        lstm_kernel,
        out_shape=jax.ShapeDtypeStruct((N, H), jnp.float32),
        in_specs=[vmem_spec] * 6,
        out_specs=vmem_spec,
        compiler_params=pltpu.CompilerParams(
            vmem_limit_bytes=32 * 1024 * 1024),
        cost_estimate=pl.CostEstimate(flops=flops,
                                      transcendentals=transcendentals,
                                      bytes_accessed=bytes_accessed),
    )(x_flat, wih0, whh0, b0, w1, b1)

    return out.reshape(B, M, H)


def lstm_reference(x, params, d_model):
    """Pure-JAX f32 reference of the same 2-layer LSTM (for verification)."""
    B, M, L, C = x.shape
    N = B * M
    H = d_model
    wih0, whh0, b0, w1, b1 = params
    wih1, whh1 = w1[:H, :], w1[H:, :]
    xs = jnp.transpose(x.reshape(N, L, C), (1, 0, 2))  # (L, N, C)

    def cell(inp, h, c, wih, whh, b):
        g = inp @ wih + h @ whh + b
        i = jax.nn.sigmoid(g[:, :H])
        f = jax.nn.sigmoid(g[:, H:2 * H])
        gg = jnp.tanh(g[:, 2 * H:3 * H])
        o = jax.nn.sigmoid(g[:, 3 * H:])
        c = f * c + i * gg
        h = o * jnp.tanh(c)
        return h, c

    def step(carry, x_t):
        h1, c1, h2, c2 = carry
        h1, c1 = cell(x_t, h1, c1, wih0, whh0, b0)
        h2, c2 = cell(h1, h2, c2, wih1, whh1, b1)
        return (h1, c1, h2, c2), None

    init = tuple(jnp.zeros((N, H), jnp.float32) for _ in range(4))
    (h1, c1, h2, c2), _ = jax.lax.scan(step, init, xs)
    return h2.reshape(B, M, H)


def make_params(key, input_size, d_model):
    """Deterministic params, PyTorch nn.LSTM init, packed for the kernel."""
    H = d_model
    k = 1.0 / jnp.sqrt(jnp.float32(H))
    ks = jax.random.split(key, 8)
    u = lambda kk, shape: jax.random.uniform(kk, shape, jnp.float32, -k, k)

    w_ih_l0 = u(ks[0], (4 * H, input_size))
    w_hh_l0 = u(ks[1], (4 * H, H))
    b_ih_l0 = u(ks[2], (4 * H,))
    b_hh_l0 = u(ks[3], (4 * H,))
    w_ih_l1 = u(ks[4], (4 * H, H))
    w_hh_l1 = u(ks[5], (4 * H, H))
    b_ih_l1 = u(ks[6], (4 * H,))
    b_hh_l1 = u(ks[7], (4 * H,))

    # Pre-transpose, fold biases, and pack layer-1's two weights into one block.
    wih0 = w_ih_l0.T                                   # (C, 4H)
    whh0 = w_hh_l0.T                                   # (H, 4H)
    b0 = (b_ih_l0 + b_hh_l0).reshape(1, 4 * H)         # (1, 4H)
    w1 = jnp.concatenate([w_ih_l1.T, w_hh_l1.T], 0)    # (2H, 4H)
    b1 = (b_ih_l1 + b_hh_l1).reshape(1, 4 * H)         # (1, 4H)
    return (wih0, whh0, b0, w1, b1)


if __name__ == "__main__":
    # x: B M patch_num patch_len
    B, M, L, C = 2, 4, 8, 16
    d_model = 32

    key = jax.random.PRNGKey(0)
    kx, kp = jax.random.split(key)
    x = jax.random.normal(kx, (B, M, L, C), dtype=jnp.float32)
    params = make_params(kp, input_size=C, d_model=d_model)

    out = lstm_forward(x, params, d_model)
    out = jax.block_until_ready(out)

    ref = lstm_reference(x, params, d_model)
    assert out.shape == (B, M, d_model)
    # bf16 MXU inputs (f32 accumulation) over an 8-step recurrence: relaxed tol.
    assert jnp.allclose(out, ref, atol=2e-2, rtol=2e-2), (
        f"max abs err = {jnp.max(jnp.abs(out - ref))}")

    print("KERNEL_OK")
</pallas_src>

<mosaic_0001>
module attributes {stable_mosaic.version = 11 : i64} {
  func.func @lstm_kernel(%arg0: memref<64x16xf32, #tpu.memory_space<vmem>>, %arg1: memref<16x128xf32, #tpu.memory_space<vmem>>, %arg2: memref<32x128xf32, #tpu.memory_space<vmem>>, %arg3: memref<1x128xf32, #tpu.memory_space<vmem>>, %arg4: memref<64x128xf32, #tpu.memory_space<vmem>>, %arg5: memref<1x128xf32, #tpu.memory_space<vmem>>, %arg6: memref<8x32xf32, #tpu.memory_space<vmem>>) attributes {dimension_semantics = [], scalar_prefetch = 0 : i64, scratch_operands = 0 : i64, tpu.core_type = #tpu.core_type<tc>} {
    %c0 = arith.constant 0 : index
    %c0_0 = arith.constant 0 : index
    %0 = vector.load %arg2[%c0, %c0_0] : memref<32x128xf32, #tpu.memory_space<vmem>>, vector<32x128xf32>
    %1 = arith.truncf %0 : vector<32x128xf32> to vector<32x128xbf16>
    %c0_1 = arith.constant 0 : index
    %c0_2 = arith.constant 0 : index
    %2 = vector.load %arg4[%c0_1, %c0_2] : memref<64x128xf32, #tpu.memory_space<vmem>>, vector<64x128xf32>
    %3 = arith.truncf %2 : vector<64x128xf32> to vector<64x128xbf16>
    %c0_3 = arith.constant 0 : index
    %c0_4 = arith.constant 0 : index
    %4 = vector.load %arg5[%c0_3, %c0_4] : memref<1x128xf32, #tpu.memory_space<vmem>>, vector<1x128xf32>
    %5 = vector.shape_cast %4 : vector<1x128xf32> to vector<1x128xf32>
    %6 = vector.broadcast %5 : vector<1x128xf32> to vector<8x128xf32>
    %c0_5 = arith.constant 0 : index
    %c0_6 = arith.constant 0 : index
    %7 = vector.load %arg0[%c0_5, %c0_6] : memref<64x16xf32, #tpu.memory_space<vmem>>, vector<64x16xf32>
    %8 = arith.truncf %7 : vector<64x16xf32> to vector<64x16xbf16>
    %c0_7 = arith.constant 0 : index
    %c0_8 = arith.constant 0 : index
    %9 = vector.load %arg1[%c0_7, %c0_8] : memref<16x128xf32, #tpu.memory_space<vmem>>, vector<16x128xf32>
    %10 = arith.truncf %9 : vector<16x128xf32> to vector<16x128xbf16>
    %cst = arith.constant dense<0.000000e+00> : vector<64x128xf32>
    %11 = tpu.matmul %8, %10, %cst {dimension_numbers = #tpu.dot_dimension_numbers<[1], [0], [0], [1], [0, 0, 1, 1], [], []>} : vector<64x16xbf16>, vector<16x128xbf16>, vector<64x128xf32> -> vector<64x128xf32>
    %c0_9 = arith.constant 0 : index
    %c0_10 = arith.constant 0 : index
    %12 = vector.load %arg3[%c0_9, %c0_10] : memref<1x128xf32, #tpu.memory_space<vmem>>, vector<1x128xf32>
    %13 = vector.broadcast %12 : vector<1x128xf32> to vector<64x128xf32>
    %14 = arith.addf %11, %13 : vector<64x128xf32>
    %cst_11 = arith.constant 0.000000e+00 : f32
    %15 = vector.broadcast %cst_11 : f32 to vector<8x32xf32>
    %cst_12 = arith.constant 0.000000e+00 : f32
    %16 = vector.broadcast %cst_12 : f32 to vector<8x32xf32>
    %cst_13 = arith.constant 0.000000e+00 : f32
    %17 = vector.broadcast %cst_13 : f32 to vector<8x32xf32>
    %cst_14 = arith.constant 0.000000e+00 : f32
    %18 = vector.broadcast %cst_14 : f32 to vector<8x32xf32>
    %19 = vector.extract_strided_slice %14 {offsets = [0, 0], sizes = [8, 128], strides = [1, 1]} : vector<64x128xf32> to vector<8x128xf32>
    %20 = arith.truncf %15 : vector<8x32xf32> to vector<8x32xbf16>
    %cst_15 = arith.constant dense<0.000000e+00> : vector<8x128xf32>
    %21 = tpu.matmul %20, %1, %cst_15 {dimension_numbers = #tpu.dot_dimension_numbers<[1], [0], [0], [1], [0, 0, 1, 1], [], []>} : vector<8x32xbf16>, vector<32x128xbf16>, vector<8x128xf32> -> vector<8x128xf32>
    %22 = arith.addf %19, %21 : vector<8x128xf32>
    %23 = arith.negf %22 : vector<8x128xf32>
    %24 = math.exp %23 : vector<8x128xf32>
    %cst_16 = arith.constant 1.000000e+00 : f32
    %25 = vector.broadcast %cst_16 : f32 to vector<8x128xf32>
    %26 = arith.addf %25, %24 : vector<8x128xf32>
    %27 = arith.divf %25, %26 : vector<8x128xf32>
    %28 = math.tanh %22 : vector<8x128xf32>
    %29 = vector.extract_strided_slice %27 {offsets = [0, 0], sizes = [8, 32], strides = [1, 1]} : vector<8x128xf32> to vector<8x32xf32>
    %30 = vector.extract_strided_slice %27 {offsets = [0, 32], sizes = [8, 32], strides = [1, 1]} : vector<8x128xf32> to vector<8x32xf32>
    %31 = vector.extract_strided_slice %28 {offsets = [0, 64], sizes = [8, 32], strides = [1, 1]} : vector<8x128xf32> to vector<8x32xf32>
    %32 = vector.extract_strided_slice %27 {offsets = [0, 96], sizes = [8, 32], strides = [1, 1]} : vector<8x128xf32> to vector<8x32xf32>
    %33 = arith.mulf %30, %16 : vector<8x32xf32>
    %34 = arith.mulf %29, %31 : vector<8x32xf32>
    %35 = arith.addf %33, %34 : vector<8x32xf32>
    %36 = math.tanh %35 : vector<8x32xf32>
    %37 = arith.mulf %32, %36 : vector<8x32xf32>
    %38 = tpu.concatenate %37, %17 in 1 : vector<8x32xf32>, vector<8x32xf32> -> vector<8x64xf32>
    %39 = arith.truncf %38 : vector<8x64xf32> to vector<8x64xbf16>
    %cst_17 = arith.constant dense<0.000000e+00> : vector<8x128xf32>
    %40 = tpu.matmul %39, %3, %cst_17 {dimension_numbers = #tpu.dot_dimension_numbers<[1], [0], [0], [1], [0, 0, 1, 1], [], []>} : vector<8x64xbf16>, vector<64x128xbf16>, vector<8x128xf32> -> vector<8x128xf32>
    %41 = arith.addf %40, %6 : vector<8x128xf32>
    %42 = arith.negf %41 : vector<8x128xf32>
    %43 = math.exp %42 : vector<8x128xf32>
    %cst_18 = arith.constant 1.000000e+00 : f32
    %44 = vector.broadcast %cst_18 : f32 to vector<8x128xf32>
    %45 = arith.addf %44, %43 : vector<8x128xf32>
    %46 = arith.divf %44, %45 : vector<8x128xf32>
    %47 = math.tanh %41 : vector<8x128xf32>
    %48 = vector.extract_strided_slice %46 {offsets = [0, 0], sizes = [8, 32], strides = [1, 1]} : vector<8x128xf32> to vector<8x32xf32>
    %49 = vector.extract_strided_slice %46 {offsets = [0, 32], sizes = [8, 32], strides = [1, 1]} : vector<8x128xf32> to vector<8x32xf32>
    %50 = vector.extract_strided_slice %47 {offsets = [0, 64], sizes = [8, 32], strides = [1, 1]} : vector<8x128xf32> to vector<8x32xf32>
    %51 = vector.extract_strided_slice %46 {offsets = [0, 96], sizes = [8, 32], strides = [1, 1]} : vector<8x128xf32> to vector<8x32xf32>
    %52 = arith.mulf %49, %18 : vector<8x32xf32>
    %53 = arith.mulf %48, %50 : vector<8x32xf32>
    %54 = arith.addf %52, %53 : vector<8x32xf32>
    %55 = math.tanh %54 : vector<8x32xf32>
    %56 = arith.mulf %51, %55 : vector<8x32xf32>
    %57 = vector.extract_strided_slice %14 {offsets = [8, 0], sizes = [8, 128], strides = [1, 1]} : vector<64x128xf32> to vector<8x128xf32>
    %58 = arith.truncf %37 : vector<8x32xf32> to vector<8x32xbf16>
    %cst_19 = arith.constant dense<0.000000e+00> : vector<8x128xf32>
    %59 = tpu.matmul %58, %1, %cst_19 {dimension_numbers = #tpu.dot_dimension_numbers<[1], [0], [0], [1], [0, 0, 1, 1], [], []>} : vector<8x32xbf16>, vector<32x128xbf16>, vector<8x128xf32> -> vector<8x128xf32>
    %60 = arith.addf %57, %59 : vector<8x128xf32>
    %61 = arith.negf %60 : vector<8x128xf32>
    %62 = math.exp %61 : vector<8x128xf32>
    %cst_20 = arith.constant 1.000000e+00 : f32
    %63 = vector.broadcast %cst_20 : f32 to vector<8x128xf32>
    %64 = arith.addf %63, %62 : vector<8x128xf32>
    %65 = arith.divf %63, %64 : vector<8x128xf32>
    %66 = math.tanh %60 : vector<8x128xf32>
    %67 = vector.extract_strided_slice %65 {offsets = [0, 0], sizes = [8, 32], strides = [1, 1]} : vector<8x128xf32> to vector<8x32xf32>
    %68 = vector.extract_strided_slice %65 {offsets = [0, 32], sizes = [8, 32], strides = [1, 1]} : vector<8x128xf32> to vector<8x32xf32>
    %69 = vector.extract_strided_slice %66 {offsets = [0, 64], sizes = [8, 32], strides = [1, 1]} : vector<8x128xf32> to vector<8x32xf32>
    %70 = vector.extract_strided_slice %65 {offsets = [0, 96], sizes = [8, 32], strides = [1, 1]} : vector<8x128xf32> to vector<8x32xf32>
    %71 = arith.mulf %68, %35 : vector<8x32xf32>
    %72 = arith.mulf %67, %69 : vector<8x32xf32>
    %73 = arith.addf %71, %72 : vector<8x32xf32>
    %74 = math.tanh %73 : vector<8x32xf32>
    %75 = arith.mulf %70, %74 : vector<8x32xf32>
    %76 = tpu.concatenate %75, %56 in 1 : vector<8x32xf32>, vector<8x32xf32> -> vector<8x64xf32>
    %77 = arith.truncf %76 : vector<8x64xf32> to vector<8x64xbf16>
    %cst_21 = arith.constant dense<0.000000e+00> : vector<8x128xf32>
    %78 = tpu.matmul %77, %3, %cst_21 {dimension_numbers = #tpu.dot_dimension_numbers<[1], [0], [0], [1], [0, 0, 1, 1], [], []>} : vector<8x64xbf16>, vector<64x128xbf16>, vector<8x128xf32> -> vector<8x128xf32>
    %79 = arith.addf %78, %6 : vector<8x128xf32>
    %80 = arith.negf %79 : vector<8x128xf32>
    %81 = math.exp %80 : vector<8x128xf32>
    %cst_22 = arith.constant 1.000000e+00 : f32
    %82 = vector.broadcast %cst_22 : f32 to vector<8x128xf32>
    %83 = arith.addf %82, %81 : vector<8x128xf32>
    %84 = arith.divf %82, %83 : vector<8x128xf32>
    %85 = math.tanh %79 : vector<8x128xf32>
    %86 = vector.extract_strided_slice %84 {offsets = [0, 0], sizes = [8, 32], strides = [1, 1]} : vector<8x128xf32> to vector<8x32xf32>
    %87 = vector.extract_strided_slice %84 {offsets = [0, 32], sizes = [8, 32], strides = [1, 1]} : vector<8x128xf32> to vector<8x32xf32>
    %88 = vector.extract_strided_slice %85 {offsets = [0, 64], sizes = [8, 32], strides = [1, 1]} : vector<8x128xf32> to vector<8x32xf32>
    %89 = vector.extract_strided_slice %84 {offsets = [0, 96], sizes = [8, 32], strides = [1, 1]} : vector<8x128xf32> to vector<8x32xf32>
    %90 = arith.mulf %87, %54 : vector<8x32xf32>
    %91 = arith.mulf %86, %88 : vector<8x32xf32>
    %92 = arith.addf %90, %91 : vector<8x32xf32>
    %93 = math.tanh %92 : vector<8x32xf32>
    %94 = arith.mulf %89, %93 : vector<8x32xf32>
    %95 = vector.extract_strided_slice %14 {offsets = [16, 0], sizes = [8, 128], strides = [1, 1]} : vector<64x128xf32> to vector<8x128xf32>
    %96 = arith.truncf %75 : vector<8x32xf32> to vector<8x32xbf16>
    %cst_23 = arith.constant dense<0.000000e+00> : vector<8x128xf32>
    %97 = tpu.matmul %96, %1, %cst_23 {dimension_numbers = #tpu.dot_dimension_numbers<[1], [0], [0], [1], [0, 0, 1, 1], [], []>} : vector<8x32xbf16>, vector<32x128xbf16>, vector<8x128xf32> -> vector<8x128xf32>
    %98 = arith.addf %95, %97 : vector<8x128xf32>
    %99 = arith.negf %98 : vector<8x128xf32>
    %100 = math.exp %99 : vector<8x128xf32>
    %cst_24 = arith.constant 1.000000e+00 : f32
    %101 = vector.broadcast %cst_24 : f32 to vector<8x128xf32>
    %102 = arith.addf %101, %100 : vector<8x128xf32>
    %103 = arith.divf %101, %102 : vector<8x128xf32>
    %104 = math.tanh %98 : vector<8x128xf32>
    %105 = vector.extract_strided_slice %103 {offsets = [0, 0], sizes = [8, 32], strides = [1, 1]} : vector<8x128xf32> to vector<8x32xf32>
    %106 = vector.extract_strided_slice %103 {offsets = [0, 32], sizes = [8, 32], strides = [1, 1]} : vector<8x128xf32> to vector<8x32xf32>
    %107 = vector.extract_strided_slice %104 {offsets = [0, 64], sizes = [8, 32], strides = [1, 1]} : vector<8x128xf32> to vector<8x32xf32>
    %108 = vector.extract_strided_slice %103 {offsets = [0, 96], sizes = [8, 32], strides = [1, 1]} : vector<8x128xf32> to vector<8x32xf32>
    %109 = arith.mulf %106, %73 : vector<8x32xf32>
    %110 = arith.mulf %105, %107 : vector<8x32xf32>
    %111 = arith.addf %109, %110 : vector<8x32xf32>
    %112 = math.tanh %111 : vector<8x32xf32>
    %113 = arith.mulf %108, %112 : vector<8x32xf32>
    %114 = tpu.concatenate %113, %94 in 1 : vector<8x32xf32>, vector<8x32xf32> -> vector<8x64xf32>
    %115 = arith.truncf %114 : vector<8x64xf32> to vector<8x64xbf16>
    %cst_25 = arith.constant dense<0.000000e+00> : vector<8x128xf32>
    %116 = tpu.matmul %115, %3, %cst_25 {dimension_numbers = #tpu.dot_dimension_numbers<[1], [0], [0], [1], [0, 0, 1, 1], [], []>} : vector<8x64xbf16>, vector<64x128xbf16>, vector<8x128xf32> -> vector<8x128xf32>
    %117 = arith.addf %116, %6 : vector<8x128xf32>
    %118 = arith.negf %117 : vector<8x128xf32>
    %119 = math.exp %118 : vector<8x128xf32>
    %cst_26 = arith.constant 1.000000e+00 : f32
    %120 = vector.broadcast %cst_26 : f32 to vector<8x128xf32>
    %121 = arith.addf %120, %119 : vector<8x128xf32>
    %122 = arith.divf %120, %121 : vector<8x128xf32>
    %123 = math.tanh %117 : vector<8x128xf32>
    %124 = vector.extract_strided_slice %122 {offsets = [0, 0], sizes = [8, 32], strides = [1, 1]} : vector<8x128xf32> to vector<8x32xf32>
    %125 = vector.extract_strided_slice %122 {offsets = [0, 32], sizes = [8, 32], strides = [1, 1]} : vector<8x128xf32> to vector<8x32xf32>
    %126 = vector.extract_strided_slice %123 {offsets = [0, 64], sizes = [8, 32], strides = [1, 1]} : vector<8x128xf32> to vector<8x32xf32>
    %127 = vector.extract_strided_slice %122 {offsets = [0, 96], sizes = [8, 32], strides = [1, 1]} : vector<8x128xf32> to vector<8x32xf32>
    %128 = arith.mulf %125, %92 : vector<8x32xf32>
    %129 = arith.mulf %124, %126 : vector<8x32xf32>
    %130 = arith.addf %128, %129 : vector<8x32xf32>
    %131 = math.tanh %130 : vector<8x32xf32>
    %132 = arith.mulf %127, %131 : vector<8x32xf32>
    %133 = vector.extract_strided_slice %14 {offsets = [24, 0], sizes = [8, 128], strides = [1, 1]} : vector<64x128xf32> to vector<8x128xf32>
    %134 = arith.truncf %113 : vector<8x32xf32> to vector<8x32xbf16>
    %cst_27 = arith.constant dense<0.000000e+00> : vector<8x128xf32>
    %135 = tpu.matmul %134, %1, %cst_27 {dimension_numbers = #tpu.dot_dimension_numbers<[1], [0], [0], [1], [0, 0, 1, 1], [], []>} : vector<8x32xbf16>, vector<32x128xbf16>, vector<8x128xf32> -> vector<8x128xf32>
    %136 = arith.addf %133, %135 : vector<8x128xf32>
    %137 = arith.negf %136 : vector<8x128xf32>
    %138 = math.exp %137 : vector<8x128xf32>
    %cst_28 = arith.constant 1.000000e+00 : f32
    %139 = vector.broadcast %cst_28 : f32 to vector<8x128xf32>
    %140 = arith.addf %139, %138 : vector<8x128xf32>
    %141 = arith.divf %139, %140 : vector<8x128xf32>
    %142 = math.tanh %136 : vector<8x128xf32>
    %143 = vector.extract_strided_slice %141 {offsets = [0, 0], sizes = [8, 32], strides = [1, 1]} : vector<8x128xf32> to vector<8x32xf32>
    %144 = vector.extract_strided_slice %141 {offsets = [0, 32], sizes = [8, 32], strides = [1, 1]} : vector<8x128xf32> to vector<8x32xf32>
    %145 = vector.extract_strided_slice %142 {offsets = [0, 64], sizes = [8, 32], strides = [1, 1]} : vector<8x128xf32> to vector<8x32xf32>
    %146 = vector.extract_strided_slice %141 {offsets = [0, 96], sizes = [8, 32], strides = [1, 1]} : vector<8x128xf32> to vector<8x32xf32>
    %147 = arith.mulf %144, %111 : vector<8x32xf32>
    %148 = arith.mulf %143, %145 : vector<8x32xf32>
    %149 = arith.addf %147, %148 : vector<8x32xf32>
    %150 = math.tanh %149 : vector<8x32xf32>
    %151 = arith.mulf %146, %150 : vector<8x32xf32>
    %152 = tpu.concatenate %151, %132 in 1 : vector<8x32xf32>, vector<8x32xf32> -> vector<8x64xf32>
    %153 = arith.truncf %152 : vector<8x64xf32> to vector<8x64xbf16>
    %cst_29 = arith.constant dense<0.000000e+00> : vector<8x128xf32>
    %154 = tpu.matmul %153, %3, %cst_29 {dimension_numbers = #tpu.dot_dimension_numbers<[1], [0], [0], [1], [0, 0, 1, 1], [], []>} : vector<8x64xbf16>, vector<64x128xbf16>, vector<8x128xf32> -> vector<8x128xf32>
    %155 = arith.addf %154, %6 : vector<8x128xf32>
    %156 = arith.negf %155 : vector<8x128xf32>
    %157 = math.exp %156 : vector<8x128xf32>
    %cst_30 = arith.constant 1.000000e+00 : f32
    %158 = vector.broadcast %cst_30 : f32 to vector<8x128xf32>
    %159 = arith.addf %158, %157 : vector<8x128xf32>
    %160 = arith.divf %158, %159 : vector<8x128xf32>
    %161 = math.tanh %155 : vector<8x128xf32>
    %162 = vector.extract_strided_slice %160 {offsets = [0, 0], sizes = [8, 32], strides = [1, 1]} : vector<8x128xf32> to vector<8x32xf32>
    %163 = vector.extract_strided_slice %160 {offsets = [0, 32], sizes = [8, 32], strides = [1, 1]} : vector<8x128xf32> to vector<8x32xf32>
    %164 = vector.extract_strided_slice %161 {offsets = [0, 64], sizes = [8, 32], strides = [1, 1]} : vector<8x128xf32> to vector<8x32xf32>
    %165 = vector.extract_strided_slice %160 {offsets = [0, 96], sizes = [8, 32], strides = [1, 1]} : vector<8x128xf32> to vector<8x32xf32>
    %166 = arith.mulf %163, %130 : vector<8x32xf32>
    %167 = arith.mulf %162, %164 : vector<8x32xf32>
    %168 = arith.addf %166, %167 : vector<8x32xf32>
    %169 = math.tanh %168 : vector<8x32xf32>
    %170 = arith.mulf %165, %169 : vector<8x32xf32>
    %171 = vector.extract_strided_slice %14 {offsets = [32, 0], sizes = [8, 128], strides = [1, 1]} : vector<64x128xf32> to vector<8x128xf32>
    %172 = arith.truncf %151 : vector<8x32xf32> to vector<8x32xbf16>
    %cst_31 = arith.constant dense<0.000000e+00> : vector<8x128xf32>
    %173 = tpu.matmul %172, %1, %cst_31 {dimension_numbers = #tpu.dot_dimension_numbers<[1], [0], [0], [1], [0, 0, 1, 1], [], []>} : vector<8x32xbf16>, vector<32x128xbf16>, vector<8x128xf32> -> vector<8x128xf32>
    %174 = arith.addf %171, %173 : vector<8x128xf32>
    %175 = arith.negf %174 : vector<8x128xf32>
    %176 = math.exp %175 : vector<8x128xf32>
    %cst_32 = arith.constant 1.000000e+00 : f32
    %177 = vector.broadcast %cst_32 : f32 to vector<8x128xf32>
    %178 = arith.addf %177, %176 : vector<8x128xf32>
    %179 = arith.divf %177, %178 : vector<8x128xf32>
    %180 = math.tanh %174 : vector<8x128xf32>
    %181 = vector.extract_strided_slice %179 {offsets = [0, 0], sizes = [8, 32], strides = [1, 1]} : vector<8x128xf32> to vector<8x32xf32>
    %182 = vector.extract_strided_slice %179 {offsets = [0, 32], sizes = [8, 32], strides = [1, 1]} : vector<8x128xf32> to vector<8x32xf32>
    %183 = vector.extract_strided_slice %180 {offsets = [0, 64], sizes = [8, 32], strides = [1, 1]} : vector<8x128xf32> to vector<8x32xf32>
    %184 = vector.extract_strided_slice %179 {offsets = [0, 96], sizes = [8, 32], strides = [1, 1]} : vector<8x128xf32> to vector<8x32xf32>
    %185 = arith.mulf %182, %149 : vector<8x32xf32>
    %186 = arith.mulf %181, %183 : vector<8x32xf32>
    %187 = arith.addf %185, %186 : vector<8x32xf32>
    %188 = math.tanh %187 : vector<8x32xf32>
    %189 = arith.mulf %184, %188 : vector<8x32xf32>
    %190 = tpu.concatenate %189, %170 in 1 : vector<8x32xf32>, vector<8x32xf32> -> vector<8x64xf32>
    %191 = arith.truncf %190 : vector<8x64xf32> to vector<8x64xbf16>
    %cst_33 = arith.constant dense<0.000000e+00> : vector<8x128xf32>
    %192 = tpu.matmul %191, %3, %cst_33 {dimension_numbers = #tpu.dot_dimension_numbers<[1], [0], [0], [1], [0, 0, 1, 1], [], []>} : vector<8x64xbf16>, vector<64x128xbf16>, vector<8x128xf32> -> vector<8x128xf32>
    %193 = arith.addf %192, %6 : vector<8x128xf32>
    %194 = arith.negf %193 : vector<8x128xf32>
    %195 = math.exp %194 : vector<8x128xf32>
    %cst_34 = arith.constant 1.000000e+00 : f32
    %196 = vector.broadcast %cst_34 : f32 to vector<8x128xf32>
    %197 = arith.addf %196, %195 : vector<8x128xf32>
    %198 = arith.divf %196, %197 : vector<8x128xf32>
    %199 = math.tanh %193 : vector<8x128xf32>
    %200 = vector.extract_strided_slice %198 {offsets = [0, 0], sizes = [8, 32], strides = [1, 1]} : vector<8x128xf32> to vector<8x32xf32>
    %201 = vector.extract_strided_slice %198 {offsets = [0, 32], sizes = [8, 32], strides = [1, 1]} : vector<8x128xf32> to vector<8x32xf32>
    %202 = vector.extract_strided_slice %199 {offsets = [0, 64], sizes = [8, 32], strides = [1, 1]} : vector<8x128xf32> to vector<8x32xf32>
    %203 = vector.extract_strided_slice %198 {offsets = [0, 96], sizes = [8, 32], strides = [1, 1]} : vector<8x128xf32> to vector<8x32xf32>
    %204 = arith.mulf %201, %168 : vector<8x32xf32>
    %205 = arith.mulf %200, %202 : vector<8x32xf32>
    %206 = arith.addf %204, %205 : vector<8x32xf32>
    %207 = math.tanh %206 : vector<8x32xf32>
    %208 = arith.mulf %203, %207 : vector<8x32xf32>
    %209 = vector.extract_strided_slice %14 {offsets = [40, 0], sizes = [8, 128], strides = [1, 1]} : vector<64x128xf32> to vector<8x128xf32>
    %210 = arith.truncf %189 : vector<8x32xf32> to vector<8x32xbf16>
    %cst_35 = arith.constant dense<0.000000e+00> : vector<8x128xf32>
    %211 = tpu.matmul %210, %1, %cst_35 {dimension_numbers = #tpu.dot_dimension_numbers<[1], [0], [0], [1], [0, 0, 1, 1], [], []>} : vector<8x32xbf16>, vector<32x128xbf16>, vector<8x128xf32> -> vector<8x128xf32>
    %212 = arith.addf %209, %211 : vector<8x128xf32>
    %213 = arith.negf %212 : vector<8x128xf32>
    %214 = math.exp %213 : vector<8x128xf32>
    %cst_36 = arith.constant 1.000000e+00 : f32
    %215 = vector.broadcast %cst_36 : f32 to vector<8x128xf32>
    %216 = arith.addf %215, %214 : vector<8x128xf32>
    %217 = arith.divf %215, %216 : vector<8x128xf32>
    %218 = math.tanh %212 : vector<8x128xf32>
    %219 = vector.extract_strided_slice %217 {offsets = [0, 0], sizes = [8, 32], strides = [1, 1]} : vector<8x128xf32> to vector<8x32xf32>
    %220 = vector.extract_strided_slice %217 {offsets = [0, 32], sizes = [8, 32], strides = [1, 1]} : vector<8x128xf32> to vector<8x32xf32>
    %221 = vector.extract_strided_slice %218 {offsets = [0, 64], sizes = [8, 32], strides = [1, 1]} : vector<8x128xf32> to vector<8x32xf32>
    %222 = vector.extract_strided_slice %217 {offsets = [0, 96], sizes = [8, 32], strides = [1, 1]} : vector<8x128xf32> to vector<8x32xf32>
    %223 = arith.mulf %220, %187 : vector<8x32xf32>
    %224 = arith.mulf %219, %221 : vector<8x32xf32>
    %225 = arith.addf %223, %224 : vector<8x32xf32>
    %226 = math.tanh %225 : vector<8x32xf32>
    %227 = arith.mulf %222, %226 : vector<8x32xf32>
    %228 = tpu.concatenate %227, %208 in 1 : vector<8x32xf32>, vector<8x32xf32> -> vector<8x64xf32>
    %229 = arith.truncf %228 : vector<8x64xf32> to vector<8x64xbf16>
    %cst_37 = arith.constant dense<0.000000e+00> : vector<8x128xf32>
    %230 = tpu.matmul %229, %3, %cst_37 {dimension_numbers = #tpu.dot_dimension_numbers<[1], [0], [0], [1], [0, 0, 1, 1], [], []>} : vector<8x64xbf16>, vector<64x128xbf16>, vector<8x128xf32> -> vector<8x128xf32>
    %231 = arith.addf %230, %6 : vector<8x128xf32>
    %232 = arith.negf %231 : vector<8x128xf32>
    %233 = math.exp %232 : vector<8x128xf32>
    %cst_38 = arith.constant 1.000000e+00 : f32
    %234 = vector.broadcast %cst_38 : f32 to vector<8x128xf32>
    %235 = arith.addf %234, %233 : vector<8x128xf32>
    %236 = arith.divf %234, %235 : vector<8x128xf32>
    %237 = math.tanh %231 : vector<8x128xf32>
    %238 = vector.extract_strided_slice %236 {offsets = [0, 0], sizes = [8, 32], strides = [1, 1]} : vector<8x128xf32> to vector<8x32xf32>
    %239 = vector.extract_strided_slice %236 {offsets = [0, 32], sizes = [8, 32], strides = [1, 1]} : vector<8x128xf32> to vector<8x32xf32>
    %240 = vector.extract_strided_slice %237 {offsets = [0, 64], sizes = [8, 32], strides = [1, 1]} : vector<8x128xf32> to vector<8x32xf32>
    %241 = vector.extract_strided_slice %236 {offsets = [0, 96], sizes = [8, 32], strides = [1, 1]} : vector<8x128xf32> to vector<8x32xf32>
    %242 = arith.mulf %239, %206 : vector<8x32xf32>
    %243 = arith.mulf %238, %240 : vector<8x32xf32>
    %244 = arith.addf %242, %243 : vector<8x32xf32>
    %245 = math.tanh %244 : vector<8x32xf32>
    %246 = arith.mulf %241, %245 : vector<8x32xf32>
    %247 = vector.extract_strided_slice %14 {offsets = [48, 0], sizes = [8, 128], strides = [1, 1]} : vector<64x128xf32> to vector<8x128xf32>
    %248 = arith.truncf %227 : vector<8x32xf32> to vector<8x32xbf16>
    %cst_39 = arith.constant dense<0.000000e+00> : vector<8x128xf32>
    %249 = tpu.matmul %248, %1, %cst_39 {dimension_numbers = #tpu.dot_dimension_numbers<[1], [0], [0], [1], [0, 0, 1, 1], [], []>} : vector<8x32xbf16>, vector<32x128xbf16>, vector<8x128xf32> -> vector<8x128xf32>
    %250 = arith.addf %247, %249 : vector<8x128xf32>
    %251 = arith.negf %250 : vector<8x128xf32>
    %252 = math.exp %251 : vector<8x128xf32>
    %cst_40 = arith.constant 1.000000e+00 : f32
    %253 = vector.broadcast %cst_40 : f32 to vector<8x128xf32>
    %254 = arith.addf %253, %252 : vector<8x128xf32>
    %255 = arith.divf %253, %254 : vector<8x128xf32>
    %256 = math.tanh %250 : vector<8x128xf32>
    %257 = vector.extract_strided_slice %255 {offsets = [0, 0], sizes = [8, 32], strides = [1, 1]} : vector<8x128xf32> to vector<8x32xf32>
    %258 = vector.extract_strided_slice %255 {offsets = [0, 32], sizes = [8, 32], strides = [1, 1]} : vector<8x128xf32> to vector<8x32xf32>
    %259 = vector.extract_strided_slice %256 {offsets = [0, 64], sizes = [8, 32], strides = [1, 1]} : vector<8x128xf32> to vector<8x32xf32>
    %260 = vector.extract_strided_slice %255 {offsets = [0, 96], sizes = [8, 32], strides = [1, 1]} : vector<8x128xf32> to vector<8x32xf32>
    %261 = arith.mulf %258, %225 : vector<8x32xf32>
    %262 = arith.mulf %257, %259 : vector<8x32xf32>
    %263 = arith.addf %261, %262 : vector<8x32xf32>
    %264 = math.tanh %263 : vector<8x32xf32>
    %265 = arith.mulf %260, %264 : vector<8x32xf32>
    %266 = tpu.concatenate %265, %246 in 1 : vector<8x32xf32>, vector<8x32xf32> -> vector<8x64xf32>
    %267 = arith.truncf %266 : vector<8x64xf32> to vector<8x64xbf16>
    %cst_41 = arith.constant dense<0.000000e+00> : vector<8x128xf32>
    %268 = tpu.matmul %267, %3, %cst_41 {dimension_numbers = #tpu.dot_dimension_numbers<[1], [0], [0], [1], [0, 0, 1, 1], [], []>} : vector<8x64xbf16>, vector<64x128xbf16>, vector<8x128xf32> -> vector<8x128xf32>
    %269 = arith.addf %268, %6 : vector<8x128xf32>
    %270 = arith.negf %269 : vector<8x128xf32>
    %271 = math.exp %270 : vector<8x128xf32>
    %cst_42 = arith.constant 1.000000e+00 : f32
    %272 = vector.broadcast %cst_42 : f32 to vector<8x128xf32>
    %273 = arith.addf %272, %271 : vector<8x128xf32>
    %274 = arith.divf %272, %273 : vector<8x128xf32>
    %275 = math.tanh %269 : vector<8x128xf32>
    %276 = vector.extract_strided_slice %274 {offsets = [0, 0], sizes = [8, 32], strides = [1, 1]} : vector<8x128xf32> to vector<8x32xf32>
    %277 = vector.extract_strided_slice %274 {offsets = [0, 32], sizes = [8, 32], strides = [1, 1]} : vector<8x128xf32> to vector<8x32xf32>
    %278 = vector.extract_strided_slice %275 {offsets = [0, 64], sizes = [8, 32], strides = [1, 1]} : vector<8x128xf32> to vector<8x32xf32>
    %279 = vector.extract_strided_slice %274 {offsets = [0, 96], sizes = [8, 32], strides = [1, 1]} : vector<8x128xf32> to vector<8x32xf32>
    %280 = arith.mulf %277, %244 : vector<8x32xf32>
    %281 = arith.mulf %276, %278 : vector<8x32xf32>
    %282 = arith.addf %280, %281 : vector<8x32xf32>
    %283 = math.tanh %282 : vector<8x32xf32>
    %284 = arith.mulf %279, %283 : vector<8x32xf32>
    %285 = vector.extract_strided_slice %14 {offsets = [56, 0], sizes = [8, 128], strides = [1, 1]} : vector<64x128xf32> to vector<8x128xf32>
    %286 = arith.truncf %265 : vector<8x32xf32> to vector<8x32xbf16>
    %cst_43 = arith.constant dense<0.000000e+00> : vector<8x128xf32>
    %287 = tpu.matmul %286, %1, %cst_43 {dimension_numbers = #tpu.dot_dimension_numbers<[1], [0], [0], [1], [0, 0, 1, 1], [], []>} : vector<8x32xbf16>, vector<32x128xbf16>, vector<8x128xf32> -> vector<8x128xf32>
    %288 = arith.addf %285, %287 : vector<8x128xf32>
    %289 = arith.negf %288 : vector<8x128xf32>
    %290 = math.exp %289 : vector<8x128xf32>
    %cst_44 = arith.constant 1.000000e+00 : f32
    %291 = vector.broadcast %cst_44 : f32 to vector<8x128xf32>
    %292 = arith.addf %291, %290 : vector<8x128xf32>
    %293 = arith.divf %291, %292 : vector<8x128xf32>
    %294 = math.tanh %288 : vector<8x128xf32>
    %295 = vector.extract_strided_slice %293 {offsets = [0, 0], sizes = [8, 32], strides = [1, 1]} : vector<8x128xf32> to vector<8x32xf32>
    %296 = vector.extract_strided_slice %293 {offsets = [0, 32], sizes = [8, 32], strides = [1, 1]} : vector<8x128xf32> to vector<8x32xf32>
    %297 = vector.extract_strided_slice %294 {offsets = [0, 64], sizes = [8, 32], strides = [1, 1]} : vector<8x128xf32> to vector<8x32xf32>
    %298 = vector.extract_strided_slice %293 {offsets = [0, 96], sizes = [8, 32], strides = [1, 1]} : vector<8x128xf32> to vector<8x32xf32>
    %299 = arith.mulf %296, %263 : vector<8x32xf32>
    %300 = arith.mulf %295, %297 : vector<8x32xf32>
    %301 = arith.addf %299, %300 : vector<8x32xf32>
    %302 = math.tanh %301 : vector<8x32xf32>
    %303 = arith.mulf %298, %302 : vector<8x32xf32>
    %304 = tpu.concatenate %303, %284 in 1 : vector<8x32xf32>, vector<8x32xf32> -> vector<8x64xf32>
    %305 = arith.truncf %304 : vector<8x64xf32> to vector<8x64xbf16>
    %cst_45 = arith.constant dense<0.000000e+00> : vector<8x128xf32>
    %306 = tpu.matmul %305, %3, %cst_45 {dimension_numbers = #tpu.dot_dimension_numbers<[1], [0], [0], [1], [0, 0, 1, 1], [], []>} : vector<8x64xbf16>, vector<64x128xbf16>, vector<8x128xf32> -> vector<8x128xf32>
    %307 = arith.addf %306, %6 : vector<8x128xf32>
    %308 = arith.negf %307 : vector<8x128xf32>
    %309 = math.exp %308 : vector<8x128xf32>
    %cst_46 = arith.constant 1.000000e+00 : f32
    %310 = vector.broadcast %cst_46 : f32 to vector<8x128xf32>
    %311 = arith.addf %310, %309 : vector<8x128xf32>
    %312 = arith.divf %310, %311 : vector<8x128xf32>
    %313 = math.tanh %307 : vector<8x128xf32>
    %314 = vector.extract_strided_slice %312 {offsets = [0, 0], sizes = [8, 32], strides = [1, 1]} : vector<8x128xf32> to vector<8x32xf32>
    %315 = vector.extract_strided_slice %312 {offsets = [0, 32], sizes = [8, 32], strides = [1, 1]} : vector<8x128xf32> to vector<8x32xf32>
    %316 = vector.extract_strided_slice %313 {offsets = [0, 64], sizes = [8, 32], strides = [1, 1]} : vector<8x128xf32> to vector<8x32xf32>
    %317 = vector.extract_strided_slice %312 {offsets = [0, 96], sizes = [8, 32], strides = [1, 1]} : vector<8x128xf32> to vector<8x32xf32>
    %318 = arith.mulf %315, %282 : vector<8x32xf32>
    %319 = arith.mulf %314, %316 : vector<8x32xf32>
    %320 = arith.addf %318, %319 : vector<8x32xf32>
    %321 = math.tanh %320 : vector<8x32xf32>
    %322 = arith.mulf %317, %321 : vector<8x32xf32>
    %c0_47 = arith.constant 0 : index
    %c0_48 = arith.constant 0 : index
    %323 = vector.load %arg6[%c0_47, %c0_48] : memref<8x32xf32, #tpu.memory_space<vmem>>, vector<8x32xf32>
    tpu.vector_store %arg6[%c0_47, %c0_48], %322 {strides = array<i32>} : memref<8x32xf32, #tpu.memory_space<vmem>>, vector<8x32xf32>,
    return
  }
}

</mosaic_0001>

<bundles_post_ra>
// kernel: tpu_custom_call.1
= control target key start
LH: loop header
LB: loop body
LE: loop exit
PB: predicated region body
PF: predicated region fallthrough
CT: control target
= control target key end

     0   :  { %11 = vsyncpa [#allocation3], 0  ;;  %s1686_s0 = inlined_call_operand.vmem [shape: f32[64,16], index: 0, kind: input, shape index: {}]   ;;  %s1687_s1 = inlined_call_operand.vmem [shape: f32[16,128], index: 1, kind: input, shape index: {}]   ;;  %s1688_s2 = inlined_call_operand.hbm [shape: f32[32,128], index: 2, kind: input, shape index: {}]   ;;  %s1689_s3 = inlined_call_operand.vmem [shape: f32[1,128], index: 3, kind: input, shape index: {}]   ;;  %s1690_s4 = inlined_call_operand.vmem [shape: f32[64,128], index: 4, kind: input, shape index: {}]   ;;  %s1691_s5 = inlined_call_operand.vmem [shape: f32[1,128], index: 5, kind: input, shape index: {}]   ;;  %s1692_s6 = inlined_call_operand.hbm [shape: f32[8,32], index: 6, kind: output, shape index: {}]  }
   0x1   :  { %12 = vsyncpa [#allocation4], 0  ;;  %s21_s23 = sshll.u32 %s1688_s2, 4  ;;  %s1334_s24 = smov [#allocation2]   ;;  %s22_s23 = int_to_ptr.hbm [resolvable:$true] %s21_s23 }
   0x2   :  { %s23_s25 = sshll.u32 %s1334_s24, 4  ;;  %s1335_s26 = smov 128   ;;  %s24_s25 = int_to_ptr.vmem [resolvable:$true] %s23_s25 }
   0x3   :  { %s1336_s27 = smov 8  }
   0x4   :  { %29 = dma.hbm_to_vmem [thread:$0]  %s22_s23, 512, %s24_s25, [#allocation3], %s1335_s26, %s1335_s26, %s1336_s27  }
   0x5   :  { %1330 = dma.done.wait [#allocation3], 512  }
   0x6   :  { %1331 = vsyncadd [#allocation3], 4294966784  ;;  %v75_v0 = vld [vmem:[%s1687_s1] sm:$0xff]  ;;  %v76_v1 = vld [vmem:[%s1687_s1 + $0x8] sm:$0xff]  ;;  %vm82_vm0 = vcmask 130048   ;;  %v1337_v12 = vmov 0  }
   0x7   :  { %v43_v2 = vld [vmem:[#allocation2 + $0x10] sm:$0xff]  ;;  %v77_v3 = vpack.c.bf16 %v76_v1, %v75_v0  ;;  %v44_v4 = vld [vmem:[#allocation2 + $0x18] sm:$0xff]  ;;  %v63_v5 = vld [vmem:[%s1686_s0] sm:$0xff]  ;;  %s1338_s12 = smov 64   ;;  %s1339_s13 = smov 32   ;;  %vm124_vm5 = vcmask 261120  }
   0x8   :  { %v64_v6 = vld [vmem:[%s1686_s0 + $0x8] sm:$0xff]  ;;  %v1391_v7 = vpack.c.bf16 %v44_v4, %v43_v2  ;;  %v41_v9 = vld [vmem:[#allocation2] sm:$0xff]  ;;  %v53_v39 = vld [vmem:[%s1690_s4 + $0x30] sm:$0xff]  ;;  %vm185_vm6 = vcmask 523264   ;;  %s1098_s24 = sshll.u32 %s1692_s6, 4  ;;  %s1099_s24 = int_to_ptr.hbm [resolvable:$true] %s1098_s24 }
   0x9   :  { %v71_v8 = vpack.c.bf16 %v64_v6, %v63_v5  ;;  %v42_v10 = vld [vmem:[#allocation2 + $0x8] sm:$0xff]  ;;  %102 = vmatpush.bf16.msra.mxu0 %v77_v3  ;;  %v1407_v13 = vld [vmem:[%s1689_s3] ss:$0 sm:$0xff]  ;;  %v54_v40 = vld [vmem:[%s1690_s4 + $0x38] sm:$0xff] }
   0xa   :  { %134 = vmatpush.bf16.msra.mxu1 %v1391_v7  ;;  %v1394_v11 = vpack.c.bf16 %v42_v10, %v41_v9  ;;  %252 = vmatpush.bf16.msra.mxu3 %v1391_v7  ;;  %v51_v41 = vld [vmem:[%s1690_s4 + $0x20] sm:$0xff]  ;;  %v1425_v42 = vpack.c.bf16 %v54_v40, %v53_v39  ;;  %v52_v43 = vld [vmem:[%s1690_s4 + $0x28] sm:$0xff]  ;;  %v49_v45 = vld [vmem:[%s1690_s4 + $0x10] sm:$0xff] }
   0xb   :  { %v1431_v44 = vpack.c.bf16 %v52_v43, %v51_v41  ;;  %v50_v46 = vld [vmem:[%s1690_s4 + $0x18] sm:$0xff]  ;;  %v47_v51 = vld [vmem:[%s1690_s4] sm:$0xff]  ;;  %v48_v52 = vld [vmem:[%s1690_s4 + $0x8] sm:$0xff] }
   0xc   :  { %1108 = vmatmul.msk.bf16.vlgmr.msra.gmra.mxu0 %vm82_vm0, %v71_v8  ;;  %193 = vmatpush.bf16.msra.mxu2 %v1425_v42  ;;  %v1441_v47 = vpack.c.bf16 %v50_v46, %v49_v45  ;;  %v1454_v53 = vpack.c.bf16 %v48_v52, %v47_v51  ;;  %v1476_v58 = vld [vmem:[%s1691_s5] ss:$0 sm:$0xff] }
   0xd   :  { %857 = vmatpush.bf16.msrb.mxu0 %v1391_v7 }
   0xe   :  { %135 = vmatpush.bf16.msra.mxu1 %v1394_v11  ;;  %253 = vmatpush.bf16.msra.mxu3 %v1394_v11 }
  0x10   :  { %194 = vmatpush.bf16.msra.mxu2 %v1431_v44 }
  0x11   :  { %858 = vmatpush.bf16.msrb.mxu0 %v1394_v11  ;;  %136 = vmatmul.bf16.vlgmr.msra.gmra.mxu1 %v1337_v12 }
  0x12   :  { %373 = vmatpush.bf16.msrb.mxu3 %v1391_v7  ;;  %314 = vmatpush.bf16.msrb.mxu1 %v1425_v42 }
  0x14   :  { %195 = vmatpush.bf16.msra.mxu2 %v1441_v47 }
  0x16   :  { %374 = vmatpush.bf16.msrb.mxu3 %v1394_v11  ;;  %315 = vmatpush.bf16.msrb.mxu1 %v1431_v44 }
  0x18   :  { %196 = vmatpush.bf16.msra.mxu2 %v1454_v53 }
  0x1a   :  { %316 = vmatpush.bf16.msrb.mxu1 %v1441_v47 }
  0x1c   :  { %435 = vmatpush.bf16.msrb.mxu2 %v1425_v42 }
  0x1e   :  { %317 = vmatpush.bf16.msrb.mxu1 %v1454_v53 }
  0x20   :  { %436 = vmatpush.bf16.msrb.mxu2 %v1431_v44 }
  0x22   :  { %494 = vmatpush.bf16.msra.mxu1 %v1391_v7 }
  0x24   :  { %437 = vmatpush.bf16.msrb.mxu2 %v1441_v47 }
  0x26   :  { %495 = vmatpush.bf16.msra.mxu1 %v1394_v11 }
  0x28   :  { %438 = vmatpush.bf16.msrb.mxu2 %v1454_v53 }
  0x89   :  { %v104_v14 = vpop.f32.mrf.mxu0 }
  0x8a   :  { %v105_v15 = vadd.f32 %v1407_v13, %v104_v14 }
  0x8e   :  { %v137_v16 = vpop.f32.mrf.mxu1 }
  0x8f   :  { %v141_v17 = vadd.f32 %v137_v16, %v105_v15 }
  0x91   :  { %1152 = vtanh.f32 %v141_v17  ;;  %v1112_v20 = vmul.f32 -1.442695, %v141_v17  ;;  %v106_v63 = vpop.f32.mrf.mxu0 }
  0x92   :  { %v107_v0 = vadd.f32 %v1407_v13, %v106_v63 }
  0x93   :  { %1154 = vpow2.f32 %v1112_v20 }
  0x96   :  { %v139_v18 = vpop.f32.mrf.mxu1 }
  0x97   :  { %v1153_v19 = vpop.eup %1152 }
  0x98   :  { %164 = vrot.lane.b32.xlu0 %v1153_v19, %s1338_s12 }
  0x99   :  { %v1155_v21 = vpop.eup %1154 }
  0x9a   :  { %v145_v22 = vadd.f32 1.0, %v1155_v21 }
  0x9c   :  { %1156 = vrcp.f32 %v145_v22  ;;  %v157_v28 = vand.u32 2147483648, %v145_v22  ;;  %vm151_vm2 = vweird.f32 %v145_v22  ;;  %v155_v29 = vand.u32 2147483647, %v145_v22 }
  0x9e   :  { %v158_v31 = vor.u32 1.1754944e-38, %v157_v28  ;;  %vm156_vm4 = vcmp.eq.f32.partialorder %v155_v29, 8.507059e+37 }
  0xa2   :  { %v1157_v23 = vpop.eup %1156 }
  0xa3   :  { %v147_v24 = vmul.f32 %v1157_v23, %v145_v22  ;;  %vm152_vm1 = vweird.f32 %v1157_v23 }
  0xa4   :  { %vm153_vm3 = vmor %vm151_vm2, %vm152_vm1 }
  0xa5   :  { %v148_v25 = vsub.f32 1.0, %v147_v24 }
  0xa7   :  { %v149_v26 = vmul.f32 %v1157_v23, %v148_v25 }
  0xa9   :  { %v150_v27 = vadd.f32 %v1157_v23, %v149_v26 }
  0xab   :  { %v154_v30 = vsel %vm153_vm3, %v1157_v23, %v150_v27 }
  0xac   :  { %v159_v33 = vsel %vm156_vm4, %v158_v31, %v154_v30 }
  0xad   :  { %v162_v35 = vmul.f32 0.0, %v159_v33 }
 0x10a   :  { %v165_v32 = vpop.permute.xlu0 %164 }
 0x10b   :  { %v167_v34 = vmul.f32 %v165_v32, %v159_v33 }
 0x10d   :  { %169 = vrot.lane.b32.xlu0 %v167_v34, %s1339_s13 }
 0x17f   :  { %v170_v36 = vpop.permute.xlu0 %169 }
 0x180   :  { %v1412_v37 = vadd.f32 %v170_v36, %v162_v35 }
 0x182   :  { %1158 = vtanh.f32 %v1412_v37 }
 0x188   :  { %v1159_v38 = vpop.eup %1158 }
 0x189   :  { %175 = vrot.lane.b32.xlu1 %v1159_v38, %s1338_s12 }
 0x1fb   :  { %v176_v48 = vpop.permute.xlu1 %175 }
 0x1fc   :  { %v178_v49 = vmul.f32 %v176_v48, %v159_v33 }
 0x1fe   :  { %v239_v50 = vpack.c.bf16 %v178_v49, %v178_v49  ;;  %180 = vrot.lane.b32.xlu2 %v178_v49, %s1339_s13 }
 0x200   :  { %241 = vrot.lane.b32.xlu1 %v239_v50, %s1339_s13 }
 0x258   :  { %v181_v54 = vpop.permute.xlu2 %180 }
 0x259   :  { %v183_v55 = vsel %vm124_vm5, %v181_v54, 0.0 }
 0x25a   :  { %v184_v56 = vpack.c.bf16 %v183_v55, %v183_v55 }
 0x25c   :  { %1113 = vmatmul.msk.bf16.vlgmr.msra.gmra.mxu2 %vm185_vm6, %v184_v56  ;;  %v66_v56 = vld [vmem:[%s1686_s0 + $0x18] sm:$0xff] }
 0x25d   :  { %615 = vmatpush.bf16.msra.mxu2 %v1391_v7 }
 0x261   :  { %616 = vmatpush.bf16.msra.mxu2 %v1394_v11 }
 0x272   :  { %v242_v57 = vpop.permute.xlu1 %241 }
 0x273   :  { %1115 = vmatmul.msk.bf16.vlgmr.msra.gmra.mxu3 %vm124_vm5, %v242_v57 }
 0x274   :  { %556 = vmatpush.bf16.msra.mxu3 %v1425_v42 }
 0x278   :  { %557 = vmatpush.bf16.msra.mxu3 %v1431_v44 }
 0x27c   :  { %558 = vmatpush.bf16.msra.mxu3 %v1441_v47 }
 0x280   :  { %559 = vmatpush.bf16.msra.mxu3 %v1454_v53 }
 0x2df   :  { %v198_v59 = vpop.f32.mrf.mxu2 }
 0x2e0   :  { %v199_v60 = vadd.f32 %v1476_v58, %v198_v59 }
 0x2e2   :  { %1160 = vtanh.f32 %v199_v60  ;;  %v1114_v6 = vmul.f32 -1.442695, %v199_v60 }
 0x2e7   :  { %v200_v61 = vpop.f32.mrf.mxu2 }
 0x2e8   :  { %v1161_v62 = vpop.eup %1160 }
 0x2e9   :  { %224 = vrot.lane.b32.xlu0 %v1161_v62, %s1338_s12 }
 0x2f6   :  { %v255_v1 = vpop.f32.mrf.mxu3 }
 0x2f7   :  { %v259_v2 = vadd.f32 %v255_v1, %v107_v0 }
 0x2f9   :  { %1162 = vtanh.f32 %v259_v2  ;;  %v1116_v5 = vmul.f32 -1.442695, %v259_v2 }
 0x2fb   :  { %1164 = vpow2.f32 %v1116_v5 }
 0x2fc   :  { %1166 = vpow2.f32 %v1114_v6 }
 0x2fe   :  { %v257_v3 = vpop.f32.mrf.mxu3 }
 0x2ff   :  { %v1163_v4 = vpop.eup %1162 }
 0x300   :  { %282 = vrot.lane.b32.xlu2 %v1163_v4, %s1338_s12 }
 0x301   :  { %v1165_v8 = vpop.eup %1164 }
 0x302   :  { %v1167_v9 = vpop.eup %1166  ;;  %v263_v10 = vadd.f32 1.0, %v1165_v8 }
 0x303   :  { %v205_v12 = vadd.f32 1.0, %v1167_v9 }
 0x304   :  { %1168 = vrcp.f32 %v263_v10  ;;  %v275_v23 = vand.u32 2147483648, %v263_v10  ;;  %vm269_vm9 = vweird.f32 %v263_v10  ;;  %v273_v25 = vand.u32 2147483647, %v263_v10 }
 0x305   :  { %1170 = vrcp.f32 %v205_v12  ;;  %v217_v26 = vand.u32 2147483648, %v205_v12  ;;  %vm211_vm11 = vweird.f32 %v205_v12  ;;  %v215_v27 = vand.u32 2147483647, %v205_v12 }
 0x306   :  { %v276_v29 = vor.u32 1.1754944e-38, %v275_v23  ;;  %vm274_vm13 = vcmp.eq.f32.partialorder %v273_v25, 8.507059e+37 }
 0x307   :  { %v218_v31 = vor.u32 1.1754944e-38, %v217_v26  ;;  %vm216_vm14 = vcmp.eq.f32.partialorder %v215_v27, 8.507059e+37 }
 0x30a   :  { %v1169_v14 = vpop.eup %1168 }
 0x30b   :  { %v1171_v15 = vpop.eup %1170  ;;  %v265_v16 = vmul.f32 %v1169_v14, %v263_v10  ;;  %vm270_vm7 = vweird.f32 %v1169_v14 }
 0x30c   :  { %v207_v17 = vmul.f32 %v1171_v15, %v205_v12  ;;  %vm212_vm8 = vweird.f32 %v1171_v15  ;;  %vm271_vm10 = vmor %vm269_vm9, %vm270_vm7 }
 0x30d   :  { %v266_v18 = vsub.f32 1.0, %v265_v16  ;;  %vm213_vm12 = vmor %vm211_vm11, %vm212_vm8 }
 0x30e   :  { %v208_v19 = vsub.f32 1.0, %v207_v17 }
 0x30f   :  { %v267_v20 = vmul.f32 %v1169_v14, %v266_v18 }
 0x310   :  { %v209_v21 = vmul.f32 %v1171_v15, %v208_v19 }
 0x311   :  { %v268_v22 = vadd.f32 %v1169_v14, %v267_v20 }
 0x312   :  { %v210_v24 = vadd.f32 %v1171_v15, %v209_v21 }
 0x313   :  { %v272_v28 = vsel %vm271_vm10, %v1169_v14, %v268_v22 }
 0x314   :  { %v214_v30 = vsel %vm213_vm12, %v1171_v15, %v210_v24  ;;  %v277_v33 = vsel %vm274_vm13, %v276_v29, %v272_v28 }
 0x315   :  { %v219_v36 = vsel %vm216_vm14, %v218_v31, %v214_v30  ;;  %v280_v45 = vmul.f32 %v277_v33, %v1412_v37  ;;  %v65_v37 = vld [vmem:[%s1686_s0 + $0x10] sm:$0xff] }
 0x316   :  { %v222_v39 = vmul.f32 0.0, %v219_v36  ;;  %v72_v57 = vpack.c.bf16 %v66_v56, %v65_v37 }
 0x318   :  { %1109 = vmatmul.msk.bf16.gmra.mxu0 %vm82_vm0, %v72_v57 }
 0x35a   :  { %v283_v32 = vpop.permute.xlu2 %282 }
 0x35b   :  { %v285_v34 = vmul.f32 %v283_v32, %v277_v33  ;;  %v225_v35 = vpop.permute.xlu0 %224 }
 0x35c   :  { %v227_v38 = vmul.f32 %v225_v35, %v219_v36 }
 0x35d   :  { %287 = vrot.lane.b32.xlu1 %v285_v34, %s1339_s13 }
 0x35e   :  { %229 = vrot.lane.b32.xlu2 %v227_v38, %s1339_s13 }
 0x395   :  { %v109_v0 = vpop.f32.mrf.mxu0 }
 0x396   :  { %v110_v1 = vadd.f32 %v1407_v13, %v109_v0 }
 0x3b8   :  { %v230_v40 = vpop.permute.xlu2 %229 }
 0x3b9   :  { %v1484_v41 = vadd.f32 %v230_v40, %v222_v39 }
 0x3bb   :  { %1172 = vtanh.f32 %v1484_v41 }
 0x3c1   :  { %v1173_v43 = vpop.eup %1172 }
 0x3c2   :  { %235 = vrot.lane.b32.xlu1 %v1173_v43, %s1338_s12 }
 0x3cf   :  { %v288_v46 = vpop.permute.xlu1 %287 }
 0x3d0   :  { %v1489_v48 = vadd.f32 %v288_v46, %v280_v45 }
 0x3d2   :  { %1174 = vtanh.f32 %v1489_v48 }
 0x3d8   :  { %v1175_v49 = vpop.eup %1174 }
 0x3d9   :  { %293 = vrot.lane.b32.xlu0 %v1175_v49, %s1338_s12 }
 0x434   :  { %v236_v50 = vpop.permute.xlu1 %235 }
 0x435   :  { %v238_v51 = vmul.f32 %v236_v50, %v219_v36 }
 0x437   :  { %302 = vrot.lane.b32.xlu1 %v238_v51, %s1338_s12 }
 0x44b   :  { %v294_v52 = vpop.permute.xlu0 %293 }
 0x44c   :  { %v296_v54 = vmul.f32 %v294_v52, %v277_v33 }
 0x44e   :  { %v360_v55 = vpack.c.bf16 %v296_v54, %v296_v54  ;;  %298 = vrot.lane.b32.xlu0 %v296_v54, %s1339_s13 }
 0x450   :  { %362 = vrot.lane.b32.xlu2 %v360_v55, %s1339_s13 }
 0x4a9   :  { %v303_v60 = vpop.permute.xlu1 %302 }
 0x4aa   :  { %v363_v59 = vpop.permute.xlu2 %362 }
 0x4ab   :  { %1119 = vmatmul.msk.bf16.vlgmr.msrb.gmra.mxu3 %vm124_vm5, %v363_v59 }
 0x4ac   :  { %736 = vmatpush.bf16.msrb.mxu3 %v1391_v7 }
 0x4b0   :  { %737 = vmatpush.bf16.msrb.mxu3 %v1394_v11 }
 0x4c0   :  { %v299_v61 = vpop.permute.xlu0 %298 }
 0x4c1   :  { %v305_v62 = vsel %vm124_vm5, %v299_v61, %v303_v60 }
 0x4c2   :  { %v306_v63 = vpack.c.bf16 %v305_v62, %v305_v62 }
 0x4c4   :  { %1117 = vmatmul.msk.bf16.vlgmr.msrb.gmra.mxu1 %vm185_vm6, %v306_v63 }
 0x4c5   :  { %677 = vmatpush.bf16.msrb.mxu1 %v1425_v42 }
 0x4c9   :  { %678 = vmatpush.bf16.msrb.mxu1 %v1431_v44 }
 0x4cd   :  { %679 = vmatpush.bf16.msrb.mxu1 %v1441_v47 }
 0x4d1   :  { %680 = vmatpush.bf16.msrb.mxu1 %v1454_v53 }
 0x52e   :  { %v376_v2 = vpop.f32.mrf.mxu3 }
 0x52f   :  { %v380_v3 = vadd.f32 %v376_v2, %v110_v1  ;;  %v111_v2 = vpop.f32.mrf.mxu0 }
 0x531   :  { %1176 = vtanh.f32 %v380_v3  ;;  %v1120_v14 = vmul.f32 -1.442695, %v380_v3  ;;  %v112_v3 = vadd.f32 %v1407_v13, %v111_v2 }
 0x536   :  { %v378_v4 = vpop.f32.mrf.mxu3 }
 0x537   :  { %v1177_v5 = vpop.eup %1176 }
 0x538   :  { %403 = vrot.lane.b32.xlu0 %v1177_v5, %s1338_s12 }
 0x541   :  { %v319_v6 = vpop.f32.mrf.mxu1 }
 0x542   :  { %v320_v8 = vadd.f32 %v1476_v58, %v319_v6 }
 0x544   :  { %1178 = vtanh.f32 %v320_v8  ;;  %v1118_v12 = vmul.f32 -1.442695, %v320_v8 }
 0x546   :  { %1180 = vpow2.f32 %v1118_v12 }
 0x547   :  { %1182 = vpow2.f32 %v1120_v14 }
 0x549   :  { %v321_v9 = vpop.f32.mrf.mxu1 }
 0x54a   :  { %v1179_v10 = vpop.eup %1178 }
 0x54b   :  { %345 = vrot.lane.b32.xlu2 %v1179_v10, %s1338_s12 }
 0x54c   :  { %v1181_v15 = vpop.eup %1180 }
 0x54d   :  { %v326_v16 = vadd.f32 1.0, %v1181_v15  ;;  %v1183_v17 = vpop.eup %1182 }
 0x54e   :  { %v384_v18 = vadd.f32 1.0, %v1183_v17 }
 0x54f   :  { %1184 = vrcp.f32 %v326_v16  ;;  %v338_v27 = vand.u32 2147483648, %v326_v16  ;;  %vm332_vm1 = vweird.f32 %v326_v16  ;;  %v336_v29 = vand.u32 2147483647, %v326_v16 }
 0x550   :  { %1186 = vrcp.f32 %v384_v18  ;;  %v396_v33 = vand.u32 2147483648, %v384_v18  ;;  %vm390_vm7 = vweird.f32 %v384_v18  ;;  %v394_v36 = vand.u32 2147483647, %v384_v18 }
 0x551   :  { %v339_v31 = vor.u32 1.1754944e-38, %v338_v27  ;;  %vm337_vm4 = vcmp.eq.f32.partialorder %v336_v29, 8.507059e+37 }
 0x552   :  { %v397_v40 = vor.u32 1.1754944e-38, %v396_v33  ;;  %vm395_vm9 = vcmp.eq.f32.partialorder %v394_v36, 8.507059e+37 }
 0x555   :  { %v1185_v19 = vpop.eup %1184 }
 0x556   :  { %v328_v20 = vmul.f32 %v1185_v19, %v326_v16  ;;  %v1187_v21 = vpop.eup %1186  ;;  %vm333_vm15 = vweird.f32 %v1185_v19 }
 0x557   :  { %v386_v23 = vmul.f32 %v1187_v21, %v384_v18  ;;  %vm334_vm2 = vmor %vm332_vm1, %vm333_vm15  ;;  %vm391_vm3 = vweird.f32 %v1187_v21 }
 0x558   :  { %v329_v22 = vsub.f32 1.0, %v328_v20  ;;  %vm392_vm8 = vmor %vm390_vm7, %vm391_vm3 }
 0x559   :  { %v387_v25 = vsub.f32 1.0, %v386_v23 }
 0x55a   :  { %v330_v24 = vmul.f32 %v1185_v19, %v329_v22 }
 0x55b   :  { %v388_v28 = vmul.f32 %v1187_v21, %v387_v25 }
 0x55c   :  { %v331_v26 = vadd.f32 %v1185_v19, %v330_v24 }
 0x55d   :  { %v389_v32 = vadd.f32 %v1187_v21, %v388_v28 }
 0x55e   :  { %v335_v30 = vsel %vm334_vm2, %v1185_v19, %v331_v26 }
 0x55f   :  { %v340_v35 = vsel %vm337_vm4, %v339_v31, %v335_v30  ;;  %v393_v39 = vsel %vm392_vm8, %v1187_v21, %v389_v32 }
 0x560   :  { %v398_v45 = vsel %vm395_vm9, %v397_v40, %v393_v39  ;;  %v343_v54 = vmul.f32 %v340_v35, %v1484_v41 }
 0x561   :  { %v401_v49 = vmul.f32 %v398_v45, %v1489_v48 }
 0x5a5   :  { %v346_v34 = vpop.permute.xlu2 %345 }
 0x5a6   :  { %v348_v38 = vmul.f32 %v346_v34, %v340_v35 }
 0x5a8   :  { %350 = vrot.lane.b32.xlu1 %v348_v38, %s1339_s13 }
 0x5aa   :  { %v404_v43 = vpop.permute.xlu0 %403 }
 0x5ab   :  { %v406_v46 = vmul.f32 %v404_v43, %v398_v45 }
 0x5ad   :  { %408 = vrot.lane.b32.xlu2 %v406_v46, %s1339_s13 }
 0x607   :  { %v409_v50 = vpop.permute.xlu2 %408 }
 0x608   :  { %v1519_v51 = vadd.f32 %v409_v50, %v401_v49 }
 0x60a   :  { %1188 = vtanh.f32 %v1519_v51 }
 0x610   :  { %v1189_v52 = vpop.eup %1188 }
 0x611   :  { %414 = vrot.lane.b32.xlu1 %v1189_v52, %s1338_s12 }
 0x61a   :  { %v351_v55 = vpop.permute.xlu1 %350 }
 0x61b   :  { %v1524_v37 = vadd.f32 %v351_v55, %v343_v54 }
 0x61d   :  { %1190 = vtanh.f32 %v1524_v37 }
 0x623   :  { %v1191_v56 = vpop.eup %1190 }
 0x624   :  { %356 = vrot.lane.b32.xlu0 %v1191_v56, %s1338_s12 }
 0x683   :  { %v415_v57 = vpop.permute.xlu1 %414 }
 0x684   :  { %v417_v48 = vmul.f32 %v415_v57, %v398_v45 }
 0x686   :  { %v481_v59 = vpack.c.bf16 %v417_v48, %v417_v48  ;;  %419 = vrot.lane.b32.xlu2 %v417_v48, %s1339_s13 }
 0x688   :  { %483 = vrot.lane.b32.xlu1 %v481_v59, %s1339_s13 }
 0x696   :  { %v357_v60 = vpop.permute.xlu0 %356 }
 0x697   :  { %v359_v61 = vmul.f32 %v357_v60, %v340_v35 }
 0x699   :  { %423 = vrot.lane.b32.xlu0 %v359_v61, %s1338_s12 }
 0x6e0   :  { %v420_v62 = vpop.permute.xlu2 %419 }
 0x6fa   :  { %v484_v41 = vpop.permute.xlu1 %483 }
 0x6fb   :  { %1123 = vmatmul.msk.bf16.vlgmr.msra.gmra.mxu1 %vm124_vm5, %v484_v41 }
 0x6fc   :  { %919 = vmatpush.bf16.msra.mxu1 %v1425_v42 }
 0x700   :  { %920 = vmatpush.bf16.msra.mxu1 %v1431_v44 }
 0x704   :  { %921 = vmatpush.bf16.msra.mxu1 %v1441_v47 }
 0x708   :  { %922 = vmatpush.bf16.msra.mxu1 %v1454_v53 }
 0x70b   :  { %v424_v63 = vpop.permute.xlu0 %423 }
 0x70c   :  { %v426_v0 = vsel %vm124_vm5, %v420_v62, %v424_v63 }
 0x70d   :  { %v427_v1 = vpack.c.bf16 %v426_v0, %v426_v0  ;;  %v68_v0 = vld [vmem:[%s1686_s0 + $0x28] sm:$0xff] }
 0x70f   :  { %1121 = vmatmul.msk.bf16.vlgmr.msrb.gmra.mxu2 %vm185_vm6, %v427_v1 }
 0x710   :  { %798 = vmatpush.bf16.msrb.mxu2 %v1425_v42 }
 0x714   :  { %799 = vmatpush.bf16.msrb.mxu2 %v1431_v44 }
 0x718   :  { %800 = vmatpush.bf16.msrb.mxu2 %v1441_v47 }
 0x71c   :  { %801 = vmatpush.bf16.msrb.mxu2 %v1454_v53 }
 0x778   :  { %v497_v4 = vpop.f32.mrf.mxu1 }
 0x779   :  { %v501_v5 = vadd.f32 %v497_v4, %v112_v3 }
 0x77b   :  { %1192 = vtanh.f32 %v501_v5  ;;  %v1124_v15 = vmul.f32 -1.442695, %v501_v5 }
 0x780   :  { %v499_v6 = vpop.f32.mrf.mxu1 }
 0x781   :  { %v1193_v8 = vpop.eup %1192 }
 0x782   :  { %524 = vrot.lane.b32.xlu2 %v1193_v8, %s1338_s12 }
 0x792   :  { %v440_v9 = vpop.f32.mrf.mxu2 }
 0x793   :  { %v441_v10 = vadd.f32 %v1476_v58, %v440_v9 }
 0x795   :  { %1194 = vtanh.f32 %v441_v10  ;;  %v1122_v30 = vmul.f32 -1.442695, %v441_v10 }
 0x796   :  { %1196 = vpow2.f32 %v1124_v15 }
 0x79a   :  { %v442_v12 = vpop.f32.mrf.mxu2 }
 0x79b   :  { %v1195_v14 = vpop.eup %1194 }
 0x79c   :  { %466 = vrot.lane.b32.xlu0 %v1195_v14, %s1338_s12  ;;  %v1197_v16 = vpop.eup %1196 }
 0x79d   :  { %v505_v17 = vadd.f32 1.0, %v1197_v16 }
 0x79f   :  { %1198 = vrcp.f32 %v505_v17  ;;  %v517_v23 = vand.u32 2147483648, %v505_v17  ;;  %vm511_vm11 = vweird.f32 %v505_v17  ;;  %v515_v24 = vand.u32 2147483647, %v505_v17 }
 0x7a0   :  { %1200 = vpow2.f32 %v1122_v30 }
 0x7a1   :  { %v518_v26 = vor.u32 1.1754944e-38, %v517_v23  ;;  %vm516_vm13 = vcmp.eq.f32.partialorder %v515_v24, 8.507059e+37 }
 0x7a5   :  { %v1199_v18 = vpop.eup %1198 }
 0x7a6   :  { %v507_v19 = vmul.f32 %v1199_v18, %v505_v17  ;;  %vm512_vm10 = vweird.f32 %v1199_v18  ;;  %v1201_v31 = vpop.eup %1200 }
 0x7a7   :  { %vm513_vm12 = vmor %vm511_vm11, %vm512_vm10  ;;  %v447_v32 = vadd.f32 1.0, %v1201_v31 }
 0x7a8   :  { %v508_v20 = vsub.f32 1.0, %v507_v19 }
 0x7a9   :  { %1202 = vrcp.f32 %v447_v32  ;;  %v459_v39 = vand.u32 2147483648, %v447_v32  ;;  %vm453_vm15 = vweird.f32 %v447_v32  ;;  %v457_v40 = vand.u32 2147483647, %v447_v32 }
 0x7aa   :  { %v509_v21 = vmul.f32 %v1199_v18, %v508_v20 }
 0x7ab   :  { %v460_v45 = vor.u32 1.1754944e-38, %v459_v39  ;;  %vm458_vm2 = vcmp.eq.f32.partialorder %v457_v40, 8.507059e+37 }
 0x7ac   :  { %v510_v22 = vadd.f32 %v1199_v18, %v509_v21 }
 0x7ae   :  { %v514_v25 = vsel %vm513_vm12, %v1199_v18, %v510_v22 }
 0x7af   :  { %v519_v28 = vsel %vm516_vm13, %v518_v26, %v514_v25  ;;  %v1203_v33 = vpop.eup %1202 }
 0x7b0   :  { %v449_v34 = vmul.f32 %v1203_v33, %v447_v32  ;;  %vm454_vm14 = vweird.f32 %v1203_v33  ;;  %v522_v52 = vmul.f32 %v519_v28, %v1519_v51 }
 0x7b1   :  { %vm455_vm1 = vmor %vm453_vm15, %vm454_vm14 }
 0x7b2   :  { %v450_v35 = vsub.f32 1.0, %v449_v34 }
 0x7b4   :  { %v451_v36 = vmul.f32 %v1203_v33, %v450_v35 }
 0x7b6   :  { %v452_v38 = vadd.f32 %v1203_v33, %v451_v36 }
 0x7b8   :  { %v456_v43 = vsel %vm455_vm1, %v1203_v33, %v452_v38 }
 0x7b9   :  { %v461_v49 = vsel %vm458_vm2, %v460_v45, %v456_v43 }
 0x7ba   :  { %v464_v57 = vmul.f32 %v461_v49, %v1524_v37  ;;  %v67_v37 = vld [vmem:[%s1686_s0 + $0x20] sm:$0xff] }
 0x7bb   :  { %v73_v1 = vpack.c.bf16 %v68_v0, %v67_v37 }
 0x7bd   :  { %1110 = vmatmul.msk.bf16.gmra.mxu0 %vm82_vm0, %v73_v1 }
 0x7dc   :  { %v525_v27 = vpop.permute.xlu2 %524 }
 0x7dd   :  { %v527_v29 = vmul.f32 %v525_v27, %v519_v28 }
 0x7df   :  { %529 = vrot.lane.b32.xlu1 %v527_v29, %s1339_s13 }
 0x80e   :  { %v467_v46 = vpop.permute.xlu0 %466 }
 0x80f   :  { %v469_v50 = vmul.f32 %v467_v46, %v461_v49 }
 0x811   :  { %471 = vrot.lane.b32.xlu2 %v469_v50, %s1339_s13 }
 0x83a   :  { %v114_v8 = vpop.f32.mrf.mxu0 }
 0x851   :  { %v530_v54 = vpop.permute.xlu1 %529 }
 0x852   :  { %v1549_v55 = vadd.f32 %v530_v54, %v522_v52 }
 0x854   :  { %1204 = vtanh.f32 %v1549_v55 }
 0x85a   :  { %v1205_v56 = vpop.eup %1204 }
 0x85b   :  { %535 = vrot.lane.b32.xlu0 %v1205_v56, %s1338_s12 }
 0x86b   :  { %v472_v48 = vpop.permute.xlu2 %471 }
 0x86c   :  { %v1554_v59 = vadd.f32 %v472_v48, %v464_v57 }
 0x86e   :  { %1206 = vtanh.f32 %v1554_v59 }
 0x874   :  { %v1207_v60 = vpop.eup %1206 }
 0x875   :  { %477 = vrot.lane.b32.xlu1 %v1207_v60, %s1338_s12 }
 0x8cd   :  { %v536_v61 = vpop.permute.xlu0 %535 }
 0x8ce   :  { %v538_v51 = vmul.f32 %v536_v61, %v519_v28 }
 0x8d0   :  { %v602_v41 = vpack.c.bf16 %v538_v51, %v538_v51  ;;  %540 = vrot.lane.b32.xlu0 %v538_v51, %s1339_s13 }
 0x8d2   :  { %604 = vrot.lane.b32.xlu2 %v602_v41, %s1339_s13 }
 0x8e7   :  { %v478_v62 = vpop.permute.xlu1 %477 }
 0x8e8   :  { %v480_v63 = vmul.f32 %v478_v62, %v461_v49 }
 0x8ea   :  { %544 = vrot.lane.b32.xlu1 %v480_v63, %s1338_s12 }
 0x92c   :  { %v605_v2 = vpop.permute.xlu2 %604 }
 0x92d   :  { %1127 = vmatmul.msk.bf16.vlgmr.msra.gmra.mxu2 %vm124_vm5, %v605_v2 }
 0x92e   :  { %1040 = vmatpush.bf16.msra.mxu2 %v1425_v42  ;;  %v115_v42 = vadd.f32 %v1407_v13, %v114_v8 }
 0x932   :  { %1041 = vmatpush.bf16.msra.mxu2 %v1431_v44 }
 0x936   :  { %1042 = vmatpush.bf16.msra.mxu2 %v1441_v47 }
 0x93a   :  { %1043 = vmatpush.bf16.msra.mxu2 %v1454_v53 }
 0x942   :  { %v541_v3 = vpop.permute.xlu0 %540 }
 0x95c   :  { %v545_v4 = vpop.permute.xlu1 %544 }
 0x95d   :  { %v547_v5 = vsel %vm124_vm5, %v541_v3, %v545_v4  ;;  %v116_v3 = vpop.f32.mrf.mxu0 }
 0x95e   :  { %v548_v6 = vpack.c.bf16 %v547_v5, %v547_v5  ;;  %v117_v4 = vadd.f32 %v1407_v13, %v116_v3  ;;  %v1633_v3 = vld [vmem:[%s1689_s3] ss:$0 sm:$0xff] }
 0x960   :  { %1125 = vmatmul.msk.bf16.vlgmr.msra.gmra.mxu3 %vm185_vm6, %v548_v6 }
 0x961   :  { %978 = vmatpush.bf16.msra.mxu3 %v1391_v7 }
 0x965   :  { %979 = vmatpush.bf16.msra.mxu3 %v1394_v11 }
 0x9b0   :  { %v618_v9 = vpop.f32.mrf.mxu2 }
 0x9b1   :  { %v622_v44 = vadd.f32 %v618_v9, %v115_v42 }
 0x9b3   :  { %1208 = vtanh.f32 %v622_v44  ;;  %v1128_v14 = vmul.f32 -1.442695, %v622_v44 }
 0x9b8   :  { %v620_v47 = vpop.f32.mrf.mxu2 }
 0x9b9   :  { %v1209_v10 = vpop.eup %1208 }
 0x9ba   :  { %645 = vrot.lane.b32.xlu2 %v1209_v10, %s1338_s12 }
 0x9e3   :  { %v561_v53 = vpop.f32.mrf.mxu3 }
 0x9e4   :  { %v562_v12 = vadd.f32 %v1476_v58, %v561_v53 }
 0x9e6   :  { %1210 = vtanh.f32 %v562_v12  ;;  %v1126_v29 = vmul.f32 -1.442695, %v562_v12 }
 0x9e7   :  { %1212 = vpow2.f32 %v1128_v14 }
 0x9eb   :  { %v563_v15 = vpop.f32.mrf.mxu3 }
 0x9ec   :  { %v1211_v7 = vpop.eup %1210 }
 0x9ed   :  { %587 = vrot.lane.b32.xlu0 %v1211_v7, %s1338_s12  ;;  %v1213_v11 = vpop.eup %1212 }
 0x9ee   :  { %v626_v16 = vadd.f32 1.0, %v1213_v11 }
 0x9f0   :  { %1214 = vrcp.f32 %v626_v16  ;;  %v638_v22 = vand.u32 2147483648, %v626_v16  ;;  %vm632_vm4 = vweird.f32 %v626_v16  ;;  %v636_v23 = vand.u32 2147483647, %v626_v16 }
 0x9f1   :  { %1216 = vpow2.f32 %v1126_v29 }
 0x9f2   :  { %v639_v25 = vor.u32 1.1754944e-38, %v638_v22  ;;  %vm637_vm8 = vcmp.eq.f32.partialorder %v636_v23, 8.507059e+37 }
 0x9f6   :  { %v1215_v17 = vpop.eup %1214 }
 0x9f7   :  { %v628_v18 = vmul.f32 %v1215_v17, %v626_v16  ;;  %vm633_vm3 = vweird.f32 %v1215_v17  ;;  %v1217_v30 = vpop.eup %1216 }
 0x9f8   :  { %vm634_vm7 = vmor %vm632_vm4, %vm633_vm3  ;;  %v568_v31 = vadd.f32 1.0, %v1217_v30 }
 0x9f9   :  { %v629_v19 = vsub.f32 1.0, %v628_v18 }
 0x9fa   :  { %1218 = vrcp.f32 %v568_v31  ;;  %v580_v38 = vand.u32 2147483648, %v568_v31  ;;  %vm574_vm10 = vweird.f32 %v568_v31  ;;  %v578_v39 = vand.u32 2147483647, %v568_v31 }
 0x9fb   :  { %v630_v20 = vmul.f32 %v1215_v17, %v629_v19 }
 0x9fc   :  { %v581_v43 = vor.u32 1.1754944e-38, %v580_v38  ;;  %vm579_vm12 = vcmp.eq.f32.partialorder %v578_v39, 8.507059e+37 }
 0x9fd   :  { %v631_v21 = vadd.f32 %v1215_v17, %v630_v20 }
 0x9ff   :  { %v635_v24 = vsel %vm634_vm7, %v1215_v17, %v631_v21 }
 0xa00   :  { %v640_v27 = vsel %vm637_vm8, %v639_v25, %v635_v24  ;;  %v1219_v32 = vpop.eup %1218 }
 0xa01   :  { %v570_v33 = vmul.f32 %v1219_v32, %v568_v31  ;;  %vm575_vm9 = vweird.f32 %v1219_v32  ;;  %v643_v50 = vmul.f32 %v640_v27, %v1549_v55 }
 0xa02   :  { %vm576_vm11 = vmor %vm574_vm10, %vm575_vm9 }
 0xa03   :  { %v571_v34 = vsub.f32 1.0, %v570_v33 }
 0xa05   :  { %v572_v35 = vmul.f32 %v1219_v32, %v571_v34 }
 0xa07   :  { %v573_v36 = vadd.f32 %v1219_v32, %v572_v35 }
 0xa09   :  { %v577_v40 = vsel %vm576_vm11, %v1219_v32, %v573_v36 }
 0xa0a   :  { %v582_v46 = vsel %vm579_vm12, %v581_v43, %v577_v40 }
 0xa0b   :  { %v585_v57 = vmul.f32 %v582_v46, %v1554_v59 }
 0xa14   :  { %v646_v26 = vpop.permute.xlu2 %645 }
 0xa15   :  { %v648_v28 = vmul.f32 %v646_v26, %v640_v27 }
 0xa17   :  { %650 = vrot.lane.b32.xlu1 %v648_v28, %s1339_s13 }
 0xa5f   :  { %v588_v45 = vpop.permute.xlu0 %587 }
 0xa60   :  { %v590_v49 = vmul.f32 %v588_v45, %v582_v46 }
 0xa62   :  { %592 = vrot.lane.b32.xlu2 %v590_v49, %s1339_s13 }
 0xa89   :  { %v651_v52 = vpop.permute.xlu1 %650 }
 0xa8a   :  { %v1584_v54 = vadd.f32 %v651_v52, %v643_v50 }
 0xa8c   :  { %1220 = vtanh.f32 %v1584_v54 }
 0xa92   :  { %v1221_v56 = vpop.eup %1220 }
 0xa93   :  { %656 = vrot.lane.b32.xlu0 %v1221_v56, %s1338_s12 }
 0xabc   :  { %v593_v48 = vpop.permute.xlu2 %592 }
 0xabd   :  { %v1589_v60 = vadd.f32 %v593_v48, %v585_v57 }
 0xabf   :  { %1222 = vtanh.f32 %v1589_v60 }
 0xac5   :  { %v1223_v61 = vpop.eup %1222 }
 0xac6   :  { %598 = vrot.lane.b32.xlu1 %v1223_v61, %s1338_s12  ;;  %v69_v61 = vld [vmem:[%s1686_s0 + $0x30] sm:$0xff] }
 0xb05   :  { %v657_v51 = vpop.permute.xlu0 %656 }
 0xb06   :  { %v659_v55 = vmul.f32 %v657_v51, %v640_v27 }
 0xb08   :  { %v723_v41 = vpack.c.bf16 %v659_v55, %v659_v55  ;;  %661 = vrot.lane.b32.xlu0 %v659_v55, %s1339_s13 }
 0xb0a   :  { %725 = vrot.lane.b32.xlu2 %v723_v41, %s1339_s13 }
 0xb38   :  { %v599_v62 = vpop.permute.xlu1 %598 }
 0xb39   :  { %v601_v63 = vmul.f32 %v599_v62, %v582_v46 }
 0xb3b   :  { %665 = vrot.lane.b32.xlu1 %v601_v63, %s1338_s12 }
 0xb64   :  { %v726_v59 = vpop.permute.xlu2 %725 }
 0xb65   :  { %1131 = vmatmul.msk.bf16.vlgmr.msrb.gmra.mxu3 %vm124_vm5, %v726_v59 }
 0xb7a   :  { %v662_v37 = vpop.permute.xlu0 %661 }
 0xbad   :  { %v666_v0 = vpop.permute.xlu1 %665 }
 0xbae   :  { %v668_v1 = vsel %vm124_vm5, %v662_v37, %v666_v0 }
 0xbaf   :  { %v669_v2 = vpack.c.bf16 %v668_v1, %v668_v1 }
 0xbb1   :  { %1129 = vmatmul.msk.bf16.vlgmr.msrb.gmra.mxu1 %vm185_vm6, %v669_v2 }
 0xbe8   :  { %v739_v5 = vpop.f32.mrf.mxu3 }
 0xbe9   :  { %v743_v6 = vadd.f32 %v739_v5, %v117_v4 }
 0xbeb   :  { %1224 = vtanh.f32 %v743_v6  ;;  %v1132_v53 = vmul.f32 -1.442695, %v743_v6 }
 0xbf0   :  { %v741_v8 = vpop.f32.mrf.mxu3 }
 0xbf1   :  { %v1225_v42 = vpop.eup %1224 }
 0xbf2   :  { %766 = vrot.lane.b32.xlu0 %v1225_v42, %s1338_s12 }
 0xc2e   :  { %v682_v9 = vpop.f32.mrf.mxu1 }
 0xc2f   :  { %v683_v44 = vadd.f32 %v1476_v58, %v682_v9 }
 0xc31   :  { %1226 = vtanh.f32 %v683_v44  ;;  %v1130_v23 = vmul.f32 -1.442695, %v683_v44 }
 0xc32   :  { %1228 = vpow2.f32 %v1132_v53 }
 0xc36   :  { %v684_v47 = vpop.f32.mrf.mxu1 }
 0xc37   :  { %v1227_v10 = vpop.eup %1226 }
 0xc38   :  { %708 = vrot.lane.b32.xlu2 %v1227_v10, %s1338_s12  ;;  %v1229_v12 = vpop.eup %1228 }
 0xc39   :  { %v747_v14 = vadd.f32 1.0, %v1229_v12 }
 0xc3b   :  { %1230 = vrcp.f32 %v747_v14  ;;  %v759_v17 = vand.u32 2147483648, %v747_v14  ;;  %vm753_vm14 = vweird.f32 %v747_v14  ;;  %v757_v18 = vand.u32 2147483647, %v747_v14 }
 0xc3c   :  { %1232 = vpow2.f32 %v1130_v23 }
 0xc3d   :  { %v760_v20 = vor.u32 1.1754944e-38, %v759_v17  ;;  %vm758_vm1 = vcmp.eq.f32.partialorder %v757_v18, 8.507059e+37 }
 0xc41   :  { %v1231_v13 = vpop.eup %1230 }
 0xc42   :  { %v749_v15 = vmul.f32 %v1231_v13, %v747_v14  ;;  %vm754_vm13 = vweird.f32 %v1231_v13  ;;  %v1233_v25 = vpop.eup %1232 }
 0xc43   :  { %vm755_vm15 = vmor %vm753_vm14, %vm754_vm13  ;;  %v689_v26 = vadd.f32 1.0, %v1233_v25 }
 0xc44   :  { %v750_v7 = vsub.f32 1.0, %v749_v15 }
 0xc45   :  { %1234 = vrcp.f32 %v689_v26  ;;  %v701_v32 = vand.u32 2147483648, %v689_v26  ;;  %vm695_vm3 = vweird.f32 %v689_v26  ;;  %v699_v33 = vand.u32 2147483647, %v689_v26 }
 0xc46   :  { %v751_v11 = vmul.f32 %v1231_v13, %v750_v7 }
 0xc47   :  { %v702_v35 = vor.u32 1.1754944e-38, %v701_v32  ;;  %vm700_vm7 = vcmp.eq.f32.partialorder %v699_v33, 8.507059e+37 }
 0xc48   :  { %v752_v16 = vadd.f32 %v1231_v13, %v751_v11 }
 0xc4a   :  { %v756_v19 = vsel %vm755_vm15, %v1231_v13, %v752_v16 }
 0xc4b   :  { %v761_v22 = vsel %vm758_vm1, %v760_v20, %v756_v19  ;;  %v1235_v27 = vpop.eup %1234 }
 0xc4c   :  { %v691_v28 = vmul.f32 %v1235_v27, %v689_v26  ;;  %vm696_vm2 = vweird.f32 %v1235_v27  ;;  %v764_v40 = vmul.f32 %v761_v22, %v1584_v54 }
 0xc4d   :  { %vm697_vm4 = vmor %vm695_vm3, %vm696_vm2 }
 0xc4e   :  { %v692_v29 = vsub.f32 1.0, %v691_v28 }
 0xc50   :  { %v693_v30 = vmul.f32 %v1235_v27, %v692_v29 }
 0xc52   :  { %v694_v31 = vadd.f32 %v1235_v27, %v693_v30 }
 0xc54   :  { %v698_v34 = vsel %vm697_vm4, %v1235_v27, %v694_v31 }
 0xc55   :  { %v703_v38 = vsel %vm700_vm7, %v702_v35, %v698_v34 }
 0xc56   :  { %v706_v49 = vmul.f32 %v703_v38, %v1589_v60  ;;  %v70_v60 = vld [vmem:[%s1686_s0 + $0x38] sm:$0xff] }
 0xc57   :  { %v74_v51 = vpack.c.bf16 %v70_v60, %v69_v61 }
 0xc59   :  { %1111 = vmatmul.msk.bf16.gmra.mxu0 %vm82_vm0, %v74_v51 }
 0xc64   :  { %v767_v21 = vpop.permute.xlu0 %766 }
 0xc65   :  { %v769_v24 = vmul.f32 %v767_v21, %v761_v22 }
 0xc67   :  { %771 = vrot.lane.b32.xlu2 %v769_v24, %s1339_s13 }
 0xc92   :  { %v709_v36 = vpop.permute.xlu2 %708 }
 0xc93   :  { %v711_v39 = vmul.f32 %v709_v36, %v703_v38 }
 0xc95   :  { %713 = vrot.lane.b32.xlu1 %v711_v39, %s1339_s13 }
 0xcc1   :  { %v772_v43 = vpop.permute.xlu2 %771 }
 0xcc2   :  { %v1606_v45 = vadd.f32 %v772_v43, %v764_v40 }
 0xcc4   :  { %1236 = vtanh.f32 %v1606_v45 }
 0xcca   :  { %v1237_v46 = vpop.eup %1236 }
 0xccb   :  { %777 = vrot.lane.b32.xlu1 %v1237_v46, %s1338_s12 }
 0xcd6   :  { %v119_v1 = vpop.f32.mrf.mxu0 }
 0xcd7   :  { %v120_v4 = vadd.f32 %v1633_v3, %v119_v1 }
 0xcde   :  { %v1628_v2 = vpop.f32.mrf.mxu0 }
 0xd07   :  { %v714_v50 = vpop.permute.xlu1 %713 }
 0xd08   :  { %v1611_v52 = vadd.f32 %v714_v50, %v706_v49 }
 0xd0a   :  { %1238 = vtanh.f32 %v1611_v52 }
 0xd10   :  { %v1239_v56 = vpop.eup %1238 }
 0xd11   :  { %719 = vrot.lane.b32.xlu0 %v1239_v56, %s1338_s12 }
 0xd3d   :  { %v778_v57 = vpop.permute.xlu1 %777 }
 0xd3e   :  { %v780_v54 = vmul.f32 %v778_v57, %v761_v22 }
 0xd40   :  { %v844_v48 = vpack.c.bf16 %v780_v54, %v780_v54  ;;  %782 = vrot.lane.b32.xlu2 %v780_v54, %s1339_s13 }
 0xd42   :  { %846 = vrot.lane.b32.xlu1 %v844_v48, %s1339_s13 }
 0xd83   :  { %v720_v55 = vpop.permute.xlu0 %719 }
 0xd84   :  { %v722_v41 = vmul.f32 %v720_v55, %v703_v38 }
 0xd86   :  { %786 = vrot.lane.b32.xlu0 %v722_v41, %s1338_s12 }
 0xd9a   :  { %v783_v63 = vpop.permute.xlu2 %782 }
 0xdb4   :  { %v847_v62 = vpop.permute.xlu1 %846 }
 0xdb5   :  { %1135 = vmatmul.msk.bf16.vlgmr.msrb.gmra.mxu0 %vm124_vm5, %v847_v62 }
 0xdf8   :  { %v787_v59 = vpop.permute.xlu0 %786 }
 0xdf9   :  { %v789_v37 = vsel %vm124_vm5, %v783_v63, %v787_v59  ;;  %v122_v63 = vadd.f32 %v1633_v3, %v1628_v2 }
 0xdfa   :  { %v790_v0 = vpack.c.bf16 %v789_v37, %v789_v37 }
 0xdfc   :  { %1133 = vmatmul.msk.bf16.vlgmr.msrb.gmra.mxu2 %vm185_vm6, %v790_v0 }
 0xe32   :  { %v860_v5 = vpop.f32.mrf.mxu0 }
 0xe33   :  { %v864_v6 = vadd.f32 %v860_v5, %v120_v4 }
 0xe35   :  { %1240 = vtanh.f32 %v864_v6  ;;  %v1136_v9 = vmul.f32 -1.442695, %v864_v6 }
 0xe37   :  { %1242 = vpow2.f32 %v1136_v9 }
 0xe3a   :  { %v862_v8 = vpop.f32.mrf.mxu0 }
 0xe3b   :  { %v1241_v42 = vpop.eup %1240 }
 0xe3c   :  { %887 = vrot.lane.b32.xlu2 %v1241_v42, %s1338_s12  ;;  %v1663_v42 = vld [vmem:[%s1691_s5] ss:$0 sm:$0xff]  ;;  %s1340_s5 = smov [#allocation5]  }
 0xe3d   :  { %v1243_v44 = vpop.eup %1242  ;;  %s1096_s21 = sshll.u32 %s1340_s5, 4  ;;  %s1097_s21 = int_to_ptr.vmem [resolvable:$true] %s1096_s21 }
 0xe3e   :  { %v868_v47 = vadd.f32 1.0, %v1243_v44 }
 0xe40   :  { %1244 = vrcp.f32 %v868_v47  ;;  %v880_v17 = vand.u32 2147483648, %v868_v47  ;;  %vm874_vm8 = vweird.f32 %v868_v47  ;;  %v878_v18 = vand.u32 2147483647, %v868_v47 }
 0xe42   :  { %v881_v20 = vor.u32 1.1754944e-38, %v880_v17  ;;  %vm879_vm10 = vcmp.eq.f32.partialorder %v878_v18, 8.507059e+37 }
 0xe46   :  { %v1245_v53 = vpop.eup %1244 }
 0xe47   :  { %v870_v14 = vmul.f32 %v1245_v53, %v868_v47  ;;  %vm875_vm0 = vweird.f32 %v1245_v53 }
 0xe48   :  { %vm876_vm9 = vmor %vm874_vm8, %vm875_vm0 }
 0xe49   :  { %v871_v15 = vsub.f32 1.0, %v870_v14 }
 0xe4b   :  { %v872_v11 = vmul.f32 %v1245_v53, %v871_v15 }
 0xe4d   :  { %v873_v16 = vadd.f32 %v1245_v53, %v872_v11 }
 0xe4f   :  { %v877_v19 = vsel %vm876_vm9, %v1245_v53, %v873_v16 }
 0xe50   :  { %v882_v22 = vsel %vm879_vm10, %v881_v20, %v877_v19 }
 0xe51   :  { %v885_v39 = vmul.f32 %v882_v22, %v1606_v45 }
 0xe7f   :  { %v803_v10 = vpop.f32.mrf.mxu2 }
 0xe80   :  { %v804_v12 = vadd.f32 %v1476_v58, %v803_v10 }
 0xe82   :  { %1246 = vtanh.f32 %v804_v12  ;;  %v1134_v23 = vmul.f32 -1.442695, %v804_v12 }
 0xe84   :  { %1248 = vpow2.f32 %v1134_v23 }
 0xe87   :  { %v805_v13 = vpop.f32.mrf.mxu2 }
 0xe88   :  { %v1247_v7 = vpop.eup %1246 }
 0xe89   :  { %829 = vrot.lane.b32.xlu0 %v1247_v7, %s1338_s12 }
 0xe8a   :  { %v1249_v24 = vpop.eup %1248 }
 0xe8b   :  { %v810_v25 = vadd.f32 1.0, %v1249_v24 }
 0xe8d   :  { %1250 = vrcp.f32 %v810_v25  ;;  %v822_v31 = vand.u32 2147483648, %v810_v25  ;;  %vm816_vm12 = vweird.f32 %v810_v25  ;;  %v820_v32 = vand.u32 2147483647, %v810_v25 }
 0xe8f   :  { %v823_v34 = vor.u32 1.1754944e-38, %v822_v31  ;;  %vm821_vm14 = vcmp.eq.f32.partialorder %v820_v32, 8.507059e+37 }
 0xe93   :  { %v1251_v26 = vpop.eup %1250 }
 0xe94   :  { %v812_v27 = vmul.f32 %v1251_v26, %v810_v25  ;;  %vm817_vm11 = vweird.f32 %v1251_v26 }
 0xe95   :  { %vm818_vm13 = vmor %vm816_vm12, %vm817_vm11 }
 0xe96   :  { %v888_v21 = vpop.permute.xlu2 %887  ;;  %v813_v28 = vsub.f32 1.0, %v812_v27 }
 0xe97   :  { %v890_v58 = vmul.f32 %v888_v21, %v882_v22 }
 0xe98   :  { %v814_v29 = vmul.f32 %v1251_v26, %v813_v28 }
 0xe99   :  { %892 = vrot.lane.b32.xlu1 %v890_v58, %s1339_s13 }
 0xe9a   :  { %v815_v30 = vadd.f32 %v1251_v26, %v814_v29 }
 0xe9c   :  { %v819_v33 = vsel %vm818_vm13, %v1251_v26, %v815_v30 }
 0xe9d   :  { %v824_v36 = vsel %vm821_vm14, %v823_v34, %v819_v33 }
 0xe9e   :  { %v827_v49 = vmul.f32 %v824_v36, %v1611_v52 }
 0xefb   :  { %v830_v35 = vpop.permute.xlu0 %829 }
 0xefc   :  { %v832_v38 = vmul.f32 %v830_v35, %v824_v36 }
 0xefe   :  { %834 = vrot.lane.b32.xlu2 %v832_v38, %s1339_s13 }
 0xf0b   :  { %v893_v40 = vpop.permute.xlu1 %892 }
 0xf0c   :  { %v1642_v43 = vadd.f32 %v893_v40, %v885_v39 }
 0xf0e   :  { %1252 = vtanh.f32 %v1642_v43 }
 0xf14   :  { %v1253_v46 = vpop.eup %1252 }
 0xf15   :  { %898 = vrot.lane.b32.xlu0 %v1253_v46, %s1338_s12 }
 0xf58   :  { %v835_v50 = vpop.permute.xlu2 %834 }
 0xf59   :  { %v1647_v56 = vadd.f32 %v835_v50, %v827_v49 }
 0xf5b   :  { %1254 = vtanh.f32 %v1647_v56 }
 0xf61   :  { %v1255_v57 = vpop.eup %1254 }
 0xf62   :  { %840 = vrot.lane.b32.xlu1 %v1255_v57, %s1338_s12 }
 0xf87   :  { %v899_v54 = vpop.permute.xlu0 %898 }
 0xf88   :  { %v901_v45 = vmul.f32 %v899_v54, %v882_v22 }
 0xf8a   :  { %v965_v48 = vpack.c.bf16 %v901_v45, %v901_v45  ;;  %903 = vrot.lane.b32.xlu0 %v901_v45, %s1339_s13 }
 0xf8c   :  { %967 = vrot.lane.b32.xlu2 %v965_v48, %s1339_s13 }
 0xfd4   :  { %v841_v61 = vpop.permute.xlu1 %840 }
 0xfd5   :  { %v843_v60 = vmul.f32 %v841_v61, %v824_v36 }
 0xfd7   :  { %907 = vrot.lane.b32.xlu1 %v843_v60, %s1338_s12 }
 0xfe6   :  { %v968_v52 = vpop.permute.xlu2 %967 }
 0xfe7   :  { %1139 = vmatmul.msk.bf16.vlgmr.msra.gmra.mxu3 %vm124_vm5, %v968_v52 }
 0xffc   :  { %v904_v51 = vpop.permute.xlu0 %903 }
0x1049   :  { %v908_v55 = vpop.permute.xlu1 %907 }
0x104a   :  { %v910_v41 = vsel %vm124_vm5, %v904_v51, %v908_v55 }
0x104b   :  { %v911_v62 = vpack.c.bf16 %v910_v41, %v910_v41 }
0x104d   :  { %1137 = vmatmul.msk.bf16.vlgmr.msra.gmra.mxu1 %vm185_vm6, %v911_v62 }
0x106a   :  { %v981_v59 = vpop.f32.mrf.mxu3 }
0x106b   :  { %v985_v37 = vadd.f32 %v981_v59, %v122_v63 }
0x106d   :  { %1256 = vtanh.f32 %v985_v37  ;;  %v1140_v4 = vmul.f32 -1.442695, %v985_v37 }
0x106f   :  { %1258 = vpow2.f32 %v1140_v4 }
0x1072   :  { %v983_v0 = vpop.f32.mrf.mxu3 }
0x1073   :  { %v1257_v1 = vpop.eup %1256 }
0x1074   :  { %1008 = vrot.lane.b32.xlu0 %v1257_v1, %s1338_s12 }
0x1075   :  { %v1259_v5 = vpop.eup %1258 }
0x1076   :  { %v989_v6 = vadd.f32 1.0, %v1259_v5 }
0x1078   :  { %1260 = vrcp.f32 %v989_v6  ;;  %v1001_v14 = vand.u32 2147483648, %v989_v6  ;;  %vm995_vm1 = vweird.f32 %v989_v6  ;;  %v999_v13 = vand.u32 2147483647, %v989_v6 }
0x107a   :  { %v1002_v7 = vor.u32 1.1754944e-38, %v1001_v14  ;;  %vm1000_vm3 = vcmp.eq.f32.partialorder %v999_v13, 8.507059e+37 }
0x107e   :  { %v1261_v3 = vpop.eup %1260 }
0x107f   :  { %v991_v47 = vmul.f32 %v1261_v3, %v989_v6  ;;  %vm996_vm15 = vweird.f32 %v1261_v3 }
0x1080   :  { %vm997_vm2 = vmor %vm995_vm1, %vm996_vm15 }
0x1081   :  { %v992_v10 = vsub.f32 1.0, %v991_v47 }
0x1083   :  { %v993_v53 = vmul.f32 %v1261_v3, %v992_v10 }
0x1085   :  { %v994_v12 = vadd.f32 %v1261_v3, %v993_v53 }
0x1087   :  { %v998_v15 = vsel %vm997_vm2, %v1261_v3, %v994_v12 }
0x1088   :  { %v1003_v16 = vsel %vm1000_vm3, %v1002_v7, %v998_v15 }
0x1089   :  { %v1006_v32 = vmul.f32 %v1003_v16, %v1642_v43 }
0x10ca   :  { %v924_v8 = vpop.f32.mrf.mxu1 }
0x10cb   :  { %v925_v2 = vadd.f32 %v1663_v42, %v924_v8 }
0x10cd   :  { %1262 = vtanh.f32 %v925_v2  ;;  %v1138_v18 = vmul.f32 -1.442695, %v925_v2 }
0x10cf   :  { %1264 = vpow2.f32 %v1138_v18 }
0x10d2   :  { %v926_v9 = vpop.f32.mrf.mxu1 }
0x10d3   :  { %v1263_v44 = vpop.eup %1262 }
0x10d4   :  { %950 = vrot.lane.b32.xlu2 %v1263_v44, %s1338_s12 }
0x10d5   :  { %v1265_v19 = vpop.eup %1264 }
0x10d6   :  { %v931_v20 = vadd.f32 1.0, %v1265_v19 }
0x10d8   :  { %1266 = vrcp.f32 %v931_v20  ;;  %v943_v25 = vand.u32 2147483648, %v931_v20  ;;  %vm937_vm7 = vweird.f32 %v931_v20  ;;  %v941_v26 = vand.u32 2147483647, %v931_v20 }
0x10da   :  { %v944_v28 = vor.u32 1.1754944e-38, %v943_v25  ;;  %vm942_vm8 = vcmp.eq.f32.partialorder %v941_v26, 8.507059e+37 }
0x10de   :  { %v1267_v21 = vpop.eup %1266 }
0x10df   :  { %v933_v22 = vmul.f32 %v1267_v21, %v931_v20  ;;  %vm938_vm4 = vweird.f32 %v1267_v21 }
0x10e0   :  { %vm939_vm0 = vmor %vm937_vm7, %vm938_vm4 }
0x10e1   :  { %v934_v58 = vsub.f32 1.0, %v933_v22 }
0x10e3   :  { %v935_v23 = vmul.f32 %v1267_v21, %v934_v58 }
0x10e5   :  { %v936_v24 = vadd.f32 %v1267_v21, %v935_v23 }
0x10e6   :  { %v1009_v11 = vpop.permute.xlu0 %1008 }
0x10e7   :  { %v1011_v17 = vmul.f32 %v1009_v11, %v1003_v16  ;;  %v940_v27 = vsel %vm939_vm0, %v1267_v21, %v936_v24 }
0x10e8   :  { %v945_v30 = vsel %vm942_vm8, %v944_v28, %v940_v27 }
0x10e9   :  { %1013 = vrot.lane.b32.xlu2 %v1011_v17, %s1339_s13  ;;  %v948_v36 = vmul.f32 %v945_v30, %v1647_v56 }
0x112e   :  { %v951_v29 = vpop.permute.xlu2 %950 }
0x112f   :  { %v953_v31 = vmul.f32 %v951_v29, %v945_v30 }
0x1131   :  { %955 = vrot.lane.b32.xlu1 %v953_v31, %s1339_s13 }
0x1143   :  { %v1014_v33 = vpop.permute.xlu2 %1013 }
0x1144   :  { %v1016_v34 = vadd.f32 %v1014_v33, %v1006_v32 }
0x1146   :  { %1268 = vtanh.f32 %v1016_v34 }
0x114c   :  { %v1269_v35 = vpop.eup %1268 }
0x114d   :  { %1019 = vrot.lane.b32.xlu1 %v1269_v35, %s1338_s12 }
0x11a3   :  { %v956_v38 = vpop.permute.xlu1 %955 }
0x11a4   :  { %v958_v39 = vadd.f32 %v956_v38, %v948_v36 }
0x11a6   :  { %1270 = vtanh.f32 %v958_v39 }
0x11ac   :  { %v1271_v40 = vpop.eup %1270 }
0x11ad   :  { %961 = vrot.lane.b32.xlu0 %v1271_v40, %s1338_s12 }
0x11bf   :  { %v1020_v46 = vpop.permute.xlu1 %1019 }
0x11c0   :  { %v1022_v49 = vmul.f32 %v1020_v46, %v1003_v16 }
0x11c2   :  { %1024 = vrot.lane.b32.xlu2 %v1022_v49, %s1339_s13 }
0x121c   :  { %v1025_v57 = vpop.permute.xlu2 %1024 }
0x121f   :  { %v962_v50 = vpop.permute.xlu0 %961 }
0x1220   :  { %v964_v43 = vmul.f32 %v962_v50, %v945_v30 }
0x1222   :  { %1028 = vrot.lane.b32.xlu0 %v964_v43, %s1338_s12 }
0x1294   :  { %v1029_v54 = vpop.permute.xlu0 %1028 }
0x1295   :  { %v1031_v45 = vsel %vm124_vm5, %v1025_v57, %v1029_v54 }
0x1296   :  { %v1032_v48 = vpack.c.bf16 %v1031_v45, %v1031_v45 }
0x1298   :  { %1141 = vmatmul.msk.bf16.vlgmr.msra.gmra.mxu2 %vm185_vm6, %v1032_v48 }
0x131b   :  { %v1045_v56 = vpop.f32.mrf.mxu2 }
0x131c   :  { %v1046_v61 = vadd.f32 %v1663_v42, %v1045_v56 }
0x131e   :  { %1272 = vtanh.f32 %v1046_v61  ;;  %v1142_v51 = vmul.f32 -1.442695, %v1046_v61 }
0x1320   :  { %1274 = vpow2.f32 %v1142_v51 }
0x1323   :  { %v1047_v60 = vpop.f32.mrf.mxu2 }
0x1324   :  { %v1273_v52 = vpop.eup %1272 }
0x1325   :  { %1071 = vrot.lane.b32.xlu1 %v1273_v52, %s1338_s12 }
0x1326   :  { %v1275_v55 = vpop.eup %1274 }
0x1327   :  { %v1052_v41 = vadd.f32 1.0, %v1275_v55 }
0x1329   :  { %1276 = vrcp.f32 %v1052_v41  ;;  %v1064_v1 = vand.u32 2147483648, %v1052_v41  ;;  %vm1058_vm6 = vweird.f32 %v1052_v41  ;;  %v1062_v4 = vand.u32 2147483647, %v1052_v41 }
0x132b   :  { %v1065_v6 = vor.u32 1.1754944e-38, %v1064_v1  ;;  %vm1063_vm11 = vcmp.eq.f32.partialorder %v1062_v4, 8.507059e+37 }
0x132f   :  { %v1277_v62 = vpop.eup %1276 }
0x1330   :  { %v1054_v63 = vmul.f32 %v1277_v62, %v1052_v41  ;;  %vm1059_vm9 = vweird.f32 %v1277_v62 }
0x1331   :  { %vm1060_vm10 = vmor %vm1058_vm6, %vm1059_vm9 }
0x1332   :  { %v1055_v59 = vsub.f32 1.0, %v1054_v63 }
0x1334   :  { %v1056_v37 = vmul.f32 %v1277_v62, %v1055_v59 }
0x1336   :  { %v1057_v0 = vadd.f32 %v1277_v62, %v1056_v37 }
0x1338   :  { %v1061_v5 = vsel %vm1060_vm10, %v1277_v62, %v1057_v0 }
0x1339   :  { %v1066_v42 = vsel %vm1063_vm11, %v1065_v6, %v1061_v5 }
0x133a   :  { %v1069_v3 = vmul.f32 %v1066_v42, %v958_v39 }
0x1397   :  { %v1072_v8 = vpop.permute.xlu1 %1071 }
0x1398   :  { %v1074_v2 = vmul.f32 %v1072_v8, %v1066_v42 }
0x139a   :  { %1076 = vrot.lane.b32.xlu2 %v1074_v2, %s1339_s13 }
0x13f4   :  { %v1077_v9 = vpop.permute.xlu2 %1076 }
0x13f5   :  { %v1079_v44 = vadd.f32 %v1077_v9, %v1069_v3 }
0x13f7   :  { %1278 = vtanh.f32 %v1079_v44 }
0x13fd   :  { %v1279_v47 = vpop.eup %1278 }
0x13fe   :  { %1082 = vrot.lane.b32.xlu0 %v1279_v47, %s1338_s12 }
0x1470   :  { %v1083_v10 = vpop.permute.xlu0 %1082 }
0x1471   :  { %v1085_v53 = vmul.f32 %v1083_v10, %v1066_v42 }
0x1473   :  { %1087 = vrot.lane.b32.xlu1 %v1085_v53, %s1339_s13 }
0x14e5   :  { %v1088_v12 = vpop.permute.xlu1 %1087 }
0x14e6   :  { %1090 = vst.msk [vmem:[#allocation5] sm:$0xff] %vm124_vm5, %v1088_v12 }
0x14e7   :  { %1101 = dma.vmem_to_hbm [thread:$0]  %s1097_s21, 128, %s1099_s24, [#allocation4]  }
0x14e8   :  { %1332 = dma.done.wait [#allocation4], 128  }
0x14e9   :  { %1333 = vsyncadd [#allocation4], 4294967168 }
0x14ea   :  { %1106 = vsyncpa [#allocation3], 1 }
0x14eb   :  { %1107 = vsyncpa [#allocation4], 1 }

</bundles_post_ra>
